<compile_context>
chip_gen: v6e
topology: v6e:2x2x1
jax: 0.10.0
libtpu: 0.0.40
codegen_flags: <defaults>
</compile_context>

<pallas_src>
import functools

import jax
import jax.numpy as jnp
from jax.experimental import pallas as pl
from jax.experimental.pallas import tpu as pltpu

# ---- synthetic "dinov2_vits14"-style config (tiny, deterministic weights) ----
PATCH = 14
IN_CHANS = 3
EMBED_DIM = 32
NUM_HEADS = 2
HEAD_DIM = EMBED_DIM // NUM_HEADS
MLP_HIDDEN = 4 * EMBED_DIM
DEPTH = 2
NUM_UNFROZEN = 1          # config['num_unfrozen_blocks']
RETURN_CLS = False        # config.get('return_cls_token', False)
LN_EPS = 1e-6

# Row order inside the packed per-block "vec" parameter (see _stack_block_params).
_VEC_LN1_W, _VEC_LN1_B, _VEC_LN2_W, _VEC_LN2_B = 0, 1, 2, 3
_VEC_PROJ_B, _VEC_FC2_B, _VEC_LS1, _VEC_LS2 = 4, 5, 6, 7


# ----------------------------- helpers ----------------------------------------
def _layernorm(h, w, b):
    mu = jnp.mean(h, axis=-1, keepdims=True)
    var = jnp.mean(jnp.square(h - mu), axis=-1, keepdims=True)
    return (h - mu) * jax.lax.rsqrt(var + LN_EPS) * w + b


# ----------------------------- fused kernel -----------------------------------
def _dinov2_kernel(patches_ref, pw_ref, tokadd_ref, vec_ref, wqkv_ref, bqkv_ref,
                   wproj_ref, fc1w_ref, fc1b_ref, fc2w_ref, o_ref, *, n_valid):
    """Whole DinoV2 forward for one batch element.

    grid = (B,).  patches_ref: (N_pad, K_pad) bf16 (cls/pad rows are zero),
    pw_ref: (K_pad, D) bf16, tokadd_ref: (N_pad, D) f32 additive init
    (cls+pos / patch_bias+pos / 0).  All per-block weights are stacked along a
    leading depth axis and loaded once (constant index_map).
    """
    # ------- patch embed + cls/pos prologue (one matmul + add) -------
    x = (jnp.dot(patches_ref[...], pw_ref[...],
                 preferred_element_type=jnp.float32)
         + tokadd_ref[...])                                     # (N_pad, D) f32

    n_pad = x.shape[0]
    scale = HEAD_DIM ** -0.5
    # Pad key columns (tokens >= n_valid) are masked out of the softmax.
    key_pad = jax.lax.broadcasted_iota(jnp.int32, (1, n_pad), 1) >= n_valid

    for l in range(DEPTH):                                      # static unroll
        vec = vec_ref[l]                                        # (8, D) f32
        ln1_w = vec[_VEC_LN1_W:_VEC_LN1_W + 1, :]
        ln1_b = vec[_VEC_LN1_B:_VEC_LN1_B + 1, :]
        ln2_w = vec[_VEC_LN2_W:_VEC_LN2_W + 1, :]
        ln2_b = vec[_VEC_LN2_B:_VEC_LN2_B + 1, :]
        proj_b = vec[_VEC_PROJ_B:_VEC_PROJ_B + 1, :]
        fc2_b = vec[_VEC_FC2_B:_VEC_FC2_B + 1, :]
        ls1 = vec[_VEC_LS1:_VEC_LS1 + 1, :]
        ls2 = vec[_VEC_LS2:_VEC_LS2 + 1, :]

        # ---------------- attention branch ----------------
        h = _layernorm(x, ln1_w, ln1_b)                         # f32
        hb = h.astype(jnp.bfloat16)

        # Fused lane-dense QKV projection: (N, D) x (D, 3D).
        qkv = (jnp.dot(hb, wqkv_ref[l], preferred_element_type=jnp.float32)
               + bqkv_ref[l])                                   # (N, 3D) f32

        ctx_heads = []
        for hh in range(NUM_HEADS):                             # static unroll
            q = qkv[:, hh * HEAD_DIM:(hh + 1) * HEAD_DIM]
            k = qkv[:, EMBED_DIM + hh * HEAD_DIM:EMBED_DIM + (hh + 1) * HEAD_DIM]
            v = qkv[:, 2 * EMBED_DIM + hh * HEAD_DIM:
                    2 * EMBED_DIM + (hh + 1) * HEAD_DIM]

            # (N, N) scores without an explicit transpose.
            s = jax.lax.dot_general(q.astype(jnp.bfloat16), k.astype(jnp.bfloat16),
                                    (((1,), (1,)), ((), ())),
                                    preferred_element_type=jnp.float32) * scale
            s = jnp.where(key_pad, -1e30, s)                    # mask pad keys
            s = s - jnp.max(s, axis=-1, keepdims=True)
            p = jnp.exp(s)
            p = p * pl.reciprocal(jnp.sum(p, axis=-1, keepdims=True), approx=True)

            ctx_heads.append(jnp.dot(p.astype(jnp.bfloat16), v.astype(jnp.bfloat16),
                                     preferred_element_type=jnp.float32))
        ctx = jnp.concatenate(ctx_heads, axis=-1)               # (N, D) f32

        # Single fused output projection: (N, D) x (D, D).
        attn = (jnp.dot(ctx.astype(jnp.bfloat16), wproj_ref[l],
                        preferred_element_type=jnp.float32) + proj_b)
        x = x + ls1 * attn                                      # LayerScale 1 + residual

        # ---------------- MLP branch ----------------
        h2 = _layernorm(x, ln2_w, ln2_b)
        m = (jnp.dot(h2.astype(jnp.bfloat16), fc1w_ref[l],
                     preferred_element_type=jnp.float32) + fc1b_ref[l])  # (N, 4D)
        # TODO(synk): PyTorch nn.GELU uses the exact erf form; tanh approximation
        # is used here for Mosaic lowering compatibility (difference ~1e-3).
        m = jax.nn.gelu(m, approximate=True)
        m = (jnp.dot(m.astype(jnp.bfloat16), fc2w_ref[l],
                     preferred_element_type=jnp.float32) + fc2_b)        # (N, D)
        x = x + ls2 * m                                         # LayerScale 2 + residual

    o_ref[...] = x.astype(o_ref.dtype)


# ----------------------------- wrappers ---------------------------------------
def _stack_block_params(blocks):
    """Stack per-block params along a depth axis (trace-time, free)."""
    vec = jnp.stack([
        jnp.concatenate([blk["ln1_w"], blk["ln1_b"], blk["ln2_w"], blk["ln2_b"],
                         blk["proj_b"], blk["fc2_b"], blk["ls1"], blk["ls2"]],
                        axis=0)
        for blk in blocks], axis=0)                                   # (L, 8, D) f32

    def st(key, dtype=None):
        a = jnp.stack([blk[key] for blk in blocks], axis=0)
        return a.astype(dtype) if dtype is not None else a

    wqkv = st("qkv_w", jnp.bfloat16)                                  # (L, D, 3D)
    bqkv = st("qkv_b")                                                # (L, 1, 3D) f32
    wproj = st("proj_w", jnp.bfloat16)                                # (L, D, D)
    fc1_w = st("fc1_w", jnp.bfloat16)                                 # (L, D, 4D)
    fc1_b = st("fc1_b")                                               # (L, 1, 4D) f32
    fc2_w = st("fc2_w", jnp.bfloat16)                                 # (L, 4D, D)
    return vec, wqkv, bqkv, wproj, fc1_w, fc1_b, fc2_w


def dinov2_fused_call(patches, pw, tok_add, stacked, n_valid):
    """Single pallas_call: patch embed + all transformer blocks, grid=(B,)."""
    b, n_pad, k_pad = patches.shape
    d = pw.shape[1]

    def const_spec(a):
        nd = a.ndim
        return pl.BlockSpec(a.shape, lambda bi: (0,) * nd)

    kernel = functools.partial(_dinov2_kernel, n_valid=n_valid)
    weights = stacked
    return pl.pallas_call(
        kernel,
        out_shape=jax.ShapeDtypeStruct((b, n_pad, d), jnp.float32),
        grid=(b,),
        in_specs=[pl.BlockSpec((None, n_pad, k_pad), lambda bi: (bi, 0, 0)),
                  const_spec(pw), const_spec(tok_add)]
                 + [const_spec(a) for a in weights],
        out_specs=pl.BlockSpec((None, n_pad, d), lambda bi: (bi, 0, 0)),
        compiler_params=pltpu.CompilerParams(
            dimension_semantics=("parallel",)),
    )(patches, pw, tok_add, *weights)


# ----------------------------- parameters -------------------------------------
def init_params(key, num_patches):
    keys = iter(jax.random.split(key, 4 + DEPTH * 8))

    def nrm(shape, scale=0.02):
        return scale * jax.random.normal(next(keys), shape, jnp.float32)

    params = {
        "patch_w": nrm((EMBED_DIM, IN_CHANS, PATCH, PATCH)),   # conv weight, NCHW kernel
        "patch_b": nrm((EMBED_DIM,)),
        "cls_token": nrm((1, 1, EMBED_DIM)),
        "pos_embed": nrm((1, 1 + num_patches, EMBED_DIM)),
        "blocks": [],
    }
    for _ in range(DEPTH):
        params["blocks"].append({
            "ln1_w": jnp.ones((1, EMBED_DIM), jnp.float32),
            "ln1_b": jnp.zeros((1, EMBED_DIM), jnp.float32),
            "qkv_w": nrm((EMBED_DIM, 3 * EMBED_DIM)),
            "qkv_b": nrm((1, 3 * EMBED_DIM)),
            "proj_w": nrm((EMBED_DIM, EMBED_DIM)),
            "proj_b": nrm((1, EMBED_DIM)),
            "ls1": jnp.full((1, EMBED_DIM), 1e-1, jnp.float32),   # LayerScale gamma
            "ln2_w": jnp.ones((1, EMBED_DIM), jnp.float32),
            "ln2_b": jnp.zeros((1, EMBED_DIM), jnp.float32),
            "fc1_w": nrm((EMBED_DIM, MLP_HIDDEN)),
            "fc1_b": nrm((1, MLP_HIDDEN)),
            "fc2_w": nrm((MLP_HIDDEN, EMBED_DIM)),
            "fc2_b": nrm((1, EMBED_DIM)),
            "ls2": jnp.full((1, EMBED_DIM), 1e-1, jnp.float32),
        })
    return params


# ----------------------------- forward pass ------------------------------------
@functools.partial(jax.jit, static_argnums=(2, 3))
def dinov2_forward(x, params, num_unfrozen_blocks=NUM_UNFROZEN,
                   return_cls_token=RETURN_CLS):
    # TODO(synk): the frozen-prefix no_grad/detach in the reference only affects
    # gradients; forward values are identical, so it is dropped here.
    del num_unfrozen_blocks
    B, C, H, W = x.shape
    Hp, Wp = H // PATCH, W // PATCH
    Np = Hp * Wp
    N = Np + 1                                                 # cls + patches
    N_pad = ((N + 7) // 8) * 8                                 # sublane-aligned tokens
    K = C * PATCH * PATCH
    K_pad = ((K + 127) // 128) * 128                           # lane-aligned contraction

    # --- prepare_tokens_with_masks (glue, trace-time JAX) ---
    # Patch rows in (c, kh, kw) order (matches conv weight.view(D, -1)); row 0
    # is the cls slot (zeros) and trailing rows are padding (zeros).
    p = x.reshape(B, C, Hp, PATCH, Wp, PATCH)
    p = p.transpose(0, 2, 4, 1, 3, 5).reshape(B, Np, K)
    patches = jnp.zeros((B, N_pad, K_pad), jnp.float32)
    patches = patches.at[:, 1:1 + Np, :K].set(p).astype(jnp.bfloat16)

    pw = params["patch_w"].reshape(EMBED_DIM, K).T
    pw = jnp.pad(pw, ((0, K_pad - K), (0, 0))).astype(jnp.bfloat16)

    # Additive token init: cls_token+pos for row 0, conv bias+pos for patch
    # rows, zeros for pad rows (so pad tokens start at exactly zero).
    tok_add = jnp.zeros((N_pad, EMBED_DIM), jnp.float32)
    tok_add = tok_add.at[0].set(params["cls_token"][0, 0] + params["pos_embed"][0, 0])
    tok_add = tok_add.at[1:1 + Np].set(params["patch_b"][None, :]
                                       + params["pos_embed"][0, 1:1 + Np])
    # (pos-embed interpolation unnecessary: grid matches the stored pos_embed)

    stacked = _stack_block_params(params["blocks"])
    h = dinov2_fused_call(patches, pw, tok_add, stacked, n_valid=N)   # (B, N_pad, D)

    x_cls = h[:, 0]
    feat = h[:, 1:1 + Np]                                      # drop cls + pad rows
    feat = feat.transpose(0, 2, 1).reshape(B, EMBED_DIM, Hp, Wp)
    if return_cls_token:
        return feat, x_cls
    return feat


# ----------------------------- main --------------------------------------------
if __name__ == "__main__":
    key = jax.random.PRNGKey(0)
    kx, kp = jax.random.split(key)

    B, C, H, W = 2, IN_CHANS, 28, 28                           # -> 2x2 patch grid, 5 tokens
    x = jax.random.normal(kx, (B, C, H, W), jnp.float32)
    params = init_params(kp, num_patches=(H // PATCH) * (W // PATCH))

    out = dinov2_forward(x, params)
    out = jax.block_until_ready(out)

    assert out.shape == (B, EMBED_DIM, H // PATCH, W // PATCH), out.shape
    assert out.dtype == jnp.float32
    print("KERNEL_OK")
</pallas_src>

<mosaic_0001>
module attributes {stable_mosaic.version = 11 : i64} {
  func.func @_dinov2_kernel(%arg0: i32, %arg1: memref<1x8x640xbf16, #tpu.memory_space<vmem>>, %arg2: memref<640x32xbf16, #tpu.memory_space<vmem>>, %arg3: memref<8x32xf32, #tpu.memory_space<vmem>>, %arg4: memref<2x8x32xf32, #tpu.memory_space<vmem>>, %arg5: memref<2x32x96xbf16, #tpu.memory_space<vmem>>, %arg6: memref<2x1x96xf32, #tpu.memory_space<vmem>>, %arg7: memref<2x32x32xbf16, #tpu.memory_space<vmem>>, %arg8: memref<2x32x128xbf16, #tpu.memory_space<vmem>>, %arg9: memref<2x1x128xf32, #tpu.memory_space<vmem>>, %arg10: memref<2x128x32xbf16, #tpu.memory_space<vmem>>, %arg11: memref<1x8x32xf32, #tpu.memory_space<vmem>>) attributes {dimension_semantics = [#tpu.dimension_semantics<parallel>], iteration_bounds = array<i64: 2>, scalar_prefetch = 0 : i64, scratch_operands = 0 : i64, tpu.core_type = #tpu.core_type<tc>, window_params = [{transform_indices = @transform_0, window_bounds = array<i64: 1, 8, 640>}, {pipeline_mode = #tpu.pipeline_mode<synchronous>, transform_indices = @transform_1, window_bounds = array<i64: 640, 32>}, {pipeline_mode = #tpu.pipeline_mode<synchronous>, transform_indices = @transform_2, window_bounds = array<i64: 8, 32>}, {pipeline_mode = #tpu.pipeline_mode<synchronous>, transform_indices = @transform_3, window_bounds = array<i64: 2, 8, 32>}, {pipeline_mode = #tpu.pipeline_mode<synchronous>, transform_indices = @transform_4, window_bounds = array<i64: 2, 32, 96>}, {pipeline_mode = #tpu.pipeline_mode<synchronous>, transform_indices = @transform_5, window_bounds = array<i64: 2, 1, 96>}, {pipeline_mode = #tpu.pipeline_mode<synchronous>, transform_indices = @transform_6, window_bounds = array<i64: 2, 32, 32>}, {pipeline_mode = #tpu.pipeline_mode<synchronous>, transform_indices = @transform_7, window_bounds = array<i64: 2, 32, 128>}, {pipeline_mode = #tpu.pipeline_mode<synchronous>, transform_indices = @transform_8, window_bounds = array<i64: 2, 1, 128>}, {pipeline_mode = #tpu.pipeline_mode<synchronous>, transform_indices = @transform_9, window_bounds = array<i64: 2, 128, 32>}, {transform_indices = @transform_10, window_bounds = array<i64: 1, 8, 32>}]} {
    %c0 = arith.constant 0 : index
    %c0_0 = arith.constant 0 : index
    %c0_1 = arith.constant 0 : index
    %0 = vector.load %arg1[%c0, %c0_0, %c0_1] : memref<1x8x640xbf16, #tpu.memory_space<vmem>>, vector<1x8x640xbf16>
    %1 = vector.shape_cast %0 : vector<1x8x640xbf16> to vector<8x640xbf16>
    %c0_2 = arith.constant 0 : index
    %c0_3 = arith.constant 0 : index
    %2 = vector.load %arg2[%c0_2, %c0_3] : memref<640x32xbf16, #tpu.memory_space<vmem>>, vector<640x32xbf16>
    %cst = arith.constant dense<0.000000e+00> : vector<8x32xf32>
    %3 = tpu.matmul %1, %2, %cst {dimension_numbers = #tpu.dot_dimension_numbers<[1], [0], [0], [1], [0, 0, 1, 1], [], []>} : vector<8x640xbf16>, vector<640x32xbf16>, vector<8x32xf32> -> vector<8x32xf32>
    %c0_4 = arith.constant 0 : index
    %c0_5 = arith.constant 0 : index
    %4 = vector.load %arg3[%c0_4, %c0_5] : memref<8x32xf32, #tpu.memory_space<vmem>>, vector<8x32xf32>
    %5 = arith.addf %3, %4 : vector<8x32xf32>
    %6 = tpu.iota {dimensions = array<i32: 1>} : vector<1x8xi32>
    %c5_i32 = arith.constant 5 : i32
    %7 = vector.broadcast %c5_i32 : i32 to vector<1x8xi32>
    %8 = arith.cmpi sge, %6, %7 : vector<1x8xi32>
    %c0_6 = arith.constant 0 : index
    %c0_7 = arith.constant 0 : index
    %c0_8 = arith.constant 0 : index
    %9 = vector.load %arg4[%c0_6, %c0_7, %c0_8] : memref<2x8x32xf32, #tpu.memory_space<vmem>>, vector<1x8x32xf32>
    %10 = vector.shape_cast %9 : vector<1x8x32xf32> to vector<8x32xf32>
    %11 = vector.extract_strided_slice %10 {offsets = [0, 0], sizes = [1, 32], strides = [1, 1]} : vector<8x32xf32> to vector<1x32xf32>
    %12 = vector.extract_strided_slice %10 {offsets = [1, 0], sizes = [1, 32], strides = [1, 1]} : vector<8x32xf32> to vector<1x32xf32>
    %13 = vector.extract_strided_slice %10 {offsets = [2, 0], sizes = [1, 32], strides = [1, 1]} : vector<8x32xf32> to vector<1x32xf32>
    %14 = vector.extract_strided_slice %10 {offsets = [3, 0], sizes = [1, 32], strides = [1, 1]} : vector<8x32xf32> to vector<1x32xf32>
    %15 = vector.extract_strided_slice %10 {offsets = [4, 0], sizes = [1, 32], strides = [1, 1]} : vector<8x32xf32> to vector<1x32xf32>
    %16 = vector.extract_strided_slice %10 {offsets = [5, 0], sizes = [1, 32], strides = [1, 1]} : vector<8x32xf32> to vector<1x32xf32>
    %17 = vector.extract_strided_slice %10 {offsets = [6, 0], sizes = [1, 32], strides = [1, 1]} : vector<8x32xf32> to vector<1x32xf32>
    %18 = vector.extract_strided_slice %10 {offsets = [7, 0], sizes = [1, 32], strides = [1, 1]} : vector<8x32xf32> to vector<1x32xf32>
    %cst_9 = arith.constant dense<0.000000e+00> : vector<8xf32>
    %19 = vector.multi_reduction <add>, %5, %cst_9 [1] : vector<8x32xf32> to vector<8xf32>
    %20 = vector.shape_cast %19 : vector<8xf32> to vector<8x1xf32>
    %cst_10 = arith.constant 3.200000e+01 : f32
    %21 = vector.broadcast %cst_10 : f32 to vector<8x1xf32>
    %22 = arith.divf %20, %21 : vector<8x1xf32>
    %23 = vector.broadcast %22 : vector<8x1xf32> to vector<8x32xf32>
    %24 = arith.subf %5, %23 : vector<8x32xf32>
    %25 = arith.mulf %24, %24 : vector<8x32xf32>
    %cst_11 = arith.constant dense<0.000000e+00> : vector<8xf32>
    %26 = vector.multi_reduction <add>, %25, %cst_11 [1] : vector<8x32xf32> to vector<8xf32>
    %27 = vector.shape_cast %26 : vector<8xf32> to vector<8x1xf32>
    %cst_12 = arith.constant 3.200000e+01 : f32
    %28 = vector.broadcast %cst_12 : f32 to vector<8x1xf32>
    %29 = arith.divf %27, %28 : vector<8x1xf32>
    %30 = vector.broadcast %22 : vector<8x1xf32> to vector<8x32xf32>
    %31 = arith.subf %5, %30 : vector<8x32xf32>
    %cst_13 = arith.constant 9.99999997E-7 : f32
    %32 = vector.broadcast %cst_13 : f32 to vector<8x1xf32>
    %33 = arith.addf %29, %32 : vector<8x1xf32>
    %34 = math.rsqrt %33 : vector<8x1xf32>
    %35 = vector.broadcast %34 : vector<8x1xf32> to vector<8x32xf32>
    %36 = arith.mulf %31, %35 : vector<8x32xf32>
    %37 = vector.broadcast %11 : vector<1x32xf32> to vector<8x32xf32>
    %38 = arith.mulf %36, %37 : vector<8x32xf32>
    %39 = vector.broadcast %12 : vector<1x32xf32> to vector<8x32xf32>
    %40 = arith.addf %38, %39 : vector<8x32xf32>
    %41 = arith.truncf %40 : vector<8x32xf32> to vector<8x32xbf16>
    %c0_14 = arith.constant 0 : index
    %c0_15 = arith.constant 0 : index
    %c0_16 = arith.constant 0 : index
    %42 = vector.load %arg5[%c0_14, %c0_15, %c0_16] : memref<2x32x96xbf16, #tpu.memory_space<vmem>>, vector<1x32x96xbf16>
    %43 = vector.shape_cast %42 : vector<1x32x96xbf16> to vector<32x96xbf16>
    %cst_17 = arith.constant dense<0.000000e+00> : vector<8x96xf32>
    %44 = tpu.matmul %41, %43, %cst_17 {dimension_numbers = #tpu.dot_dimension_numbers<[1], [0], [0], [1], [0, 0, 1, 1], [], []>} : vector<8x32xbf16>, vector<32x96xbf16>, vector<8x96xf32> -> vector<8x96xf32>
    %c0_18 = arith.constant 0 : index
    %c0_19 = arith.constant 0 : index
    %c0_20 = arith.constant 0 : index
    %45 = vector.load %arg6[%c0_18, %c0_19, %c0_20] : memref<2x1x96xf32, #tpu.memory_space<vmem>>, vector<1x1x96xf32>
    %46 = vector.shape_cast %45 : vector<1x1x96xf32> to vector<1x96xf32>
    %47 = vector.broadcast %46 : vector<1x96xf32> to vector<8x96xf32>
    %48 = arith.addf %44, %47 : vector<8x96xf32>
    %49 = vector.extract_strided_slice %48 {offsets = [0, 0], sizes = [8, 16], strides = [1, 1]} : vector<8x96xf32> to vector<8x16xf32>
    %50 = vector.extract_strided_slice %48 {offsets = [0, 32], sizes = [8, 16], strides = [1, 1]} : vector<8x96xf32> to vector<8x16xf32>
    %51 = vector.extract_strided_slice %48 {offsets = [0, 64], sizes = [8, 16], strides = [1, 1]} : vector<8x96xf32> to vector<8x16xf32>
    %52 = arith.truncf %49 : vector<8x16xf32> to vector<8x16xbf16>
    %53 = arith.truncf %50 : vector<8x16xf32> to vector<8x16xbf16>
    %cst_21 = arith.constant dense<0.000000e+00> : vector<8x8xf32>
    %54 = tpu.matmul %52, %53, %cst_21 {dimension_numbers = #tpu.dot_dimension_numbers<[1], [1], [0], [0], [0, 0, 1, 0], [], []>} : vector<8x16xbf16>, vector<8x16xbf16>, vector<8x8xf32> -> vector<8x8xf32>
    %cst_22 = arith.constant 2.500000e-01 : f32
    %55 = vector.broadcast %cst_22 : f32 to vector<8x8xf32>
    %56 = arith.mulf %54, %55 : vector<8x8xf32>
    %cst_23 = arith.constant -1.000000e+30 : f32
    %57 = vector.shape_cast %8 : vector<1x8xi1> to vector<1x8xi1>
    %58 = vector.broadcast %57 : vector<1x8xi1> to vector<8x8xi1>
    %59 = vector.broadcast %cst_23 : f32 to vector<8x8xf32>
    %60 = arith.select %58, %59, %56 : vector<8x8xi1>, vector<8x8xf32>
    %cst_24 = arith.constant dense<0xFF800000> : vector<8xf32>
    %61 = vector.multi_reduction <maximumf>, %60, %cst_24 [1] : vector<8x8xf32> to vector<8xf32>
    %62 = vector.shape_cast %61 : vector<8xf32> to vector<8x1xf32>
    %63 = vector.broadcast %62 : vector<8x1xf32> to vector<8x8xf32>
    %64 = arith.subf %60, %63 : vector<8x8xf32>
    %65 = math.exp %64 : vector<8x8xf32>
    %cst_25 = arith.constant dense<0.000000e+00> : vector<8xf32>
    %66 = vector.multi_reduction <add>, %65, %cst_25 [1] : vector<8x8xf32> to vector<8xf32>
    %67 = vector.shape_cast %66 : vector<8xf32> to vector<8x1xf32>
    %68 = tpu.reciprocal %67 {approx = true} : vector<8x1xf32> -> vector<8x1xf32>
    %69 = vector.broadcast %68 : vector<8x1xf32> to vector<8x8xf32>
    %70 = arith.mulf %65, %69 : vector<8x8xf32>
    %71 = arith.truncf %70 : vector<8x8xf32> to vector<8x8xbf16>
    %72 = arith.truncf %51 : vector<8x16xf32> to vector<8x16xbf16>
    %cst_26 = arith.constant dense<0.000000e+00> : vector<8x16xf32>
    %73 = tpu.matmul %71, %72, %cst_26 {dimension_numbers = #tpu.dot_dimension_numbers<[1], [0], [0], [1], [0, 0, 1, 1], [], []>} : vector<8x8xbf16>, vector<8x16xbf16>, vector<8x16xf32> -> vector<8x16xf32>
    %74 = vector.extract_strided_slice %48 {offsets = [0, 16], sizes = [8, 16], strides = [1, 1]} : vector<8x96xf32> to vector<8x16xf32>
    %75 = vector.extract_strided_slice %48 {offsets = [0, 48], sizes = [8, 16], strides = [1, 1]} : vector<8x96xf32> to vector<8x16xf32>
    %76 = vector.extract_strided_slice %48 {offsets = [0, 80], sizes = [8, 16], strides = [1, 1]} : vector<8x96xf32> to vector<8x16xf32>
    %77 = arith.truncf %74 : vector<8x16xf32> to vector<8x16xbf16>
    %78 = arith.truncf %75 : vector<8x16xf32> to vector<8x16xbf16>
    %cst_27 = arith.constant dense<0.000000e+00> : vector<8x8xf32>
    %79 = tpu.matmul %77, %78, %cst_27 {dimension_numbers = #tpu.dot_dimension_numbers<[1], [1], [0], [0], [0, 0, 1, 0], [], []>} : vector<8x16xbf16>, vector<8x16xbf16>, vector<8x8xf32> -> vector<8x8xf32>
    %cst_28 = arith.constant 2.500000e-01 : f32
    %80 = vector.broadcast %cst_28 : f32 to vector<8x8xf32>
    %81 = arith.mulf %79, %80 : vector<8x8xf32>
    %cst_29 = arith.constant -1.000000e+30 : f32
    %82 = vector.shape_cast %8 : vector<1x8xi1> to vector<1x8xi1>
    %83 = vector.broadcast %82 : vector<1x8xi1> to vector<8x8xi1>
    %84 = vector.broadcast %cst_29 : f32 to vector<8x8xf32>
    %85 = arith.select %83, %84, %81 : vector<8x8xi1>, vector<8x8xf32>
    %cst_30 = arith.constant dense<0xFF800000> : vector<8xf32>
    %86 = vector.multi_reduction <maximumf>, %85, %cst_30 [1] : vector<8x8xf32> to vector<8xf32>
    %87 = vector.shape_cast %86 : vector<8xf32> to vector<8x1xf32>
    %88 = vector.broadcast %87 : vector<8x1xf32> to vector<8x8xf32>
    %89 = arith.subf %85, %88 : vector<8x8xf32>
    %90 = math.exp %89 : vector<8x8xf32>
    %cst_31 = arith.constant dense<0.000000e+00> : vector<8xf32>
    %91 = vector.multi_reduction <add>, %90, %cst_31 [1] : vector<8x8xf32> to vector<8xf32>
    %92 = vector.shape_cast %91 : vector<8xf32> to vector<8x1xf32>
    %93 = tpu.reciprocal %92 {approx = true} : vector<8x1xf32> -> vector<8x1xf32>
    %94 = vector.broadcast %93 : vector<8x1xf32> to vector<8x8xf32>
    %95 = arith.mulf %90, %94 : vector<8x8xf32>
    %96 = arith.truncf %95 : vector<8x8xf32> to vector<8x8xbf16>
    %97 = arith.truncf %76 : vector<8x16xf32> to vector<8x16xbf16>
    %cst_32 = arith.constant dense<0.000000e+00> : vector<8x16xf32>
    %98 = tpu.matmul %96, %97, %cst_32 {dimension_numbers = #tpu.dot_dimension_numbers<[1], [0], [0], [1], [0, 0, 1, 1], [], []>} : vector<8x8xbf16>, vector<8x16xbf16>, vector<8x16xf32> -> vector<8x16xf32>
    %99 = tpu.concatenate %73, %98 in 1 : vector<8x16xf32>, vector<8x16xf32> -> vector<8x32xf32>
    %100 = arith.truncf %99 : vector<8x32xf32> to vector<8x32xbf16>
    %c0_33 = arith.constant 0 : index
    %c0_34 = arith.constant 0 : index
    %c0_35 = arith.constant 0 : index
    %101 = vector.load %arg7[%c0_33, %c0_34, %c0_35] : memref<2x32x32xbf16, #tpu.memory_space<vmem>>, vector<1x32x32xbf16>
    %102 = vector.shape_cast %101 : vector<1x32x32xbf16> to vector<32x32xbf16>
    %cst_36 = arith.constant dense<0.000000e+00> : vector<8x32xf32>
    %103 = tpu.matmul %100, %102, %cst_36 {dimension_numbers = #tpu.dot_dimension_numbers<[1], [0], [0], [1], [0, 0, 1, 1], [], []>} : vector<8x32xbf16>, vector<32x32xbf16>, vector<8x32xf32> -> vector<8x32xf32>
    %104 = vector.broadcast %15 : vector<1x32xf32> to vector<8x32xf32>
    %105 = arith.addf %103, %104 : vector<8x32xf32>
    %106 = vector.broadcast %17 : vector<1x32xf32> to vector<8x32xf32>
    %107 = arith.mulf %106, %105 : vector<8x32xf32>
    %108 = arith.addf %5, %107 : vector<8x32xf32>
    %cst_37 = arith.constant dense<0.000000e+00> : vector<8xf32>
    %109 = vector.multi_reduction <add>, %108, %cst_37 [1] : vector<8x32xf32> to vector<8xf32>
    %110 = vector.shape_cast %109 : vector<8xf32> to vector<8x1xf32>
    %cst_38 = arith.constant 3.200000e+01 : f32
    %111 = vector.broadcast %cst_38 : f32 to vector<8x1xf32>
    %112 = arith.divf %110, %111 : vector<8x1xf32>
    %113 = vector.broadcast %112 : vector<8x1xf32> to vector<8x32xf32>
    %114 = arith.subf %108, %113 : vector<8x32xf32>
    %115 = arith.mulf %114, %114 : vector<8x32xf32>
    %cst_39 = arith.constant dense<0.000000e+00> : vector<8xf32>
    %116 = vector.multi_reduction <add>, %115, %cst_39 [1] : vector<8x32xf32> to vector<8xf32>
    %117 = vector.shape_cast %116 : vector<8xf32> to vector<8x1xf32>
    %cst_40 = arith.constant 3.200000e+01 : f32
    %118 = vector.broadcast %cst_40 : f32 to vector<8x1xf32>
    %119 = arith.divf %117, %118 : vector<8x1xf32>
    %120 = vector.broadcast %112 : vector<8x1xf32> to vector<8x32xf32>
    %121 = arith.subf %108, %120 : vector<8x32xf32>
    %cst_41 = arith.constant 9.99999997E-7 : f32
    %122 = vector.broadcast %cst_41 : f32 to vector<8x1xf32>
    %123 = arith.addf %119, %122 : vector<8x1xf32>
    %124 = math.rsqrt %123 : vector<8x1xf32>
    %125 = vector.broadcast %124 : vector<8x1xf32> to vector<8x32xf32>
    %126 = arith.mulf %121, %125 : vector<8x32xf32>
    %127 = vector.broadcast %13 : vector<1x32xf32> to vector<8x32xf32>
    %128 = arith.mulf %126, %127 : vector<8x32xf32>
    %129 = vector.broadcast %14 : vector<1x32xf32> to vector<8x32xf32>
    %130 = arith.addf %128, %129 : vector<8x32xf32>
    %131 = arith.truncf %130 : vector<8x32xf32> to vector<8x32xbf16>
    %c0_42 = arith.constant 0 : index
    %c0_43 = arith.constant 0 : index
    %c0_44 = arith.constant 0 : index
    %132 = vector.load %arg8[%c0_42, %c0_43, %c0_44] : memref<2x32x128xbf16, #tpu.memory_space<vmem>>, vector<1x32x128xbf16>
    %133 = vector.shape_cast %132 : vector<1x32x128xbf16> to vector<32x128xbf16>
    %cst_45 = arith.constant dense<0.000000e+00> : vector<8x128xf32>
    %134 = tpu.matmul %131, %133, %cst_45 {dimension_numbers = #tpu.dot_dimension_numbers<[1], [0], [0], [1], [0, 0, 1, 1], [], []>} : vector<8x32xbf16>, vector<32x128xbf16>, vector<8x128xf32> -> vector<8x128xf32>
    %c0_46 = arith.constant 0 : index
    %c0_47 = arith.constant 0 : index
    %c0_48 = arith.constant 0 : index
    %135 = vector.load %arg9[%c0_46, %c0_47, %c0_48] : memref<2x1x128xf32, #tpu.memory_space<vmem>>, vector<1x1x128xf32>
    %136 = vector.shape_cast %135 : vector<1x1x128xf32> to vector<1x128xf32>
    %137 = vector.broadcast %136 : vector<1x128xf32> to vector<8x128xf32>
    %138 = arith.addf %134, %137 : vector<8x128xf32>
    %139 = arith.mulf %138, %138 : vector<8x128xf32>
    %140 = arith.mulf %138, %139 : vector<8x128xf32>
    %cst_49 = arith.constant 4.471500e-02 : f32
    %141 = vector.broadcast %cst_49 : f32 to vector<8x128xf32>
    %142 = arith.mulf %141, %140 : vector<8x128xf32>
    %143 = arith.addf %138, %142 : vector<8x128xf32>
    %cst_50 = arith.constant 0.797884583 : f32
    %144 = vector.broadcast %cst_50 : f32 to vector<8x128xf32>
    %145 = arith.mulf %144, %143 : vector<8x128xf32>
    %146 = math.tanh %145 : vector<8x128xf32>
    %cst_51 = arith.constant 1.000000e+00 : f32
    %147 = vector.broadcast %cst_51 : f32 to vector<8x128xf32>
    %148 = arith.addf %147, %146 : vector<8x128xf32>
    %cst_52 = arith.constant 5.000000e-01 : f32
    %149 = vector.broadcast %cst_52 : f32 to vector<8x128xf32>
    %150 = arith.mulf %149, %148 : vector<8x128xf32>
    %151 = arith.mulf %138, %150 : vector<8x128xf32>
    %152 = arith.truncf %151 : vector<8x128xf32> to vector<8x128xbf16>
    %c0_53 = arith.constant 0 : index
    %c0_54 = arith.constant 0 : index
    %c0_55 = arith.constant 0 : index
    %153 = vector.load %arg10[%c0_53, %c0_54, %c0_55] : memref<2x128x32xbf16, #tpu.memory_space<vmem>>, vector<1x128x32xbf16>
    %154 = vector.shape_cast %153 : vector<1x128x32xbf16> to vector<128x32xbf16>
    %cst_56 = arith.constant dense<0.000000e+00> : vector<8x32xf32>
    %155 = tpu.matmul %152, %154, %cst_56 {dimension_numbers = #tpu.dot_dimension_numbers<[1], [0], [0], [1], [0, 0, 1, 1], [], []>} : vector<8x128xbf16>, vector<128x32xbf16>, vector<8x32xf32> -> vector<8x32xf32>
    %156 = vector.broadcast %16 : vector<1x32xf32> to vector<8x32xf32>
    %157 = arith.addf %155, %156 : vector<8x32xf32>
    %158 = vector.broadcast %18 : vector<1x32xf32> to vector<8x32xf32>
    %159 = arith.mulf %158, %157 : vector<8x32xf32>
    %160 = arith.addf %108, %159 : vector<8x32xf32>
    %c1 = arith.constant 1 : index
    %c0_57 = arith.constant 0 : index
    %c0_58 = arith.constant 0 : index
    %161 = vector.load %arg4[%c1, %c0_57, %c0_58] : memref<2x8x32xf32, #tpu.memory_space<vmem>>, vector<1x8x32xf32>
    %162 = vector.shape_cast %161 : vector<1x8x32xf32> to vector<8x32xf32>
    %163 = vector.extract_strided_slice %162 {offsets = [0, 0], sizes = [1, 32], strides = [1, 1]} : vector<8x32xf32> to vector<1x32xf32>
    %164 = vector.extract_strided_slice %162 {offsets = [1, 0], sizes = [1, 32], strides = [1, 1]} : vector<8x32xf32> to vector<1x32xf32>
    %165 = vector.extract_strided_slice %162 {offsets = [2, 0], sizes = [1, 32], strides = [1, 1]} : vector<8x32xf32> to vector<1x32xf32>
    %166 = vector.extract_strided_slice %162 {offsets = [3, 0], sizes = [1, 32], strides = [1, 1]} : vector<8x32xf32> to vector<1x32xf32>
    %167 = vector.extract_strided_slice %162 {offsets = [4, 0], sizes = [1, 32], strides = [1, 1]} : vector<8x32xf32> to vector<1x32xf32>
    %168 = vector.extract_strided_slice %162 {offsets = [5, 0], sizes = [1, 32], strides = [1, 1]} : vector<8x32xf32> to vector<1x32xf32>
    %169 = vector.extract_strided_slice %162 {offsets = [6, 0], sizes = [1, 32], strides = [1, 1]} : vector<8x32xf32> to vector<1x32xf32>
    %170 = vector.extract_strided_slice %162 {offsets = [7, 0], sizes = [1, 32], strides = [1, 1]} : vector<8x32xf32> to vector<1x32xf32>
    %cst_59 = arith.constant dense<0.000000e+00> : vector<8xf32>
    %171 = vector.multi_reduction <add>, %160, %cst_59 [1] : vector<8x32xf32> to vector<8xf32>
    %172 = vector.shape_cast %171 : vector<8xf32> to vector<8x1xf32>
    %cst_60 = arith.constant 3.200000e+01 : f32
    %173 = vector.broadcast %cst_60 : f32 to vector<8x1xf32>
    %174 = arith.divf %172, %173 : vector<8x1xf32>
    %175 = vector.broadcast %174 : vector<8x1xf32> to vector<8x32xf32>
    %176 = arith.subf %160, %175 : vector<8x32xf32>
    %177 = arith.mulf %176, %176 : vector<8x32xf32>
    %cst_61 = arith.constant dense<0.000000e+00> : vector<8xf32>
    %178 = vector.multi_reduction <add>, %177, %cst_61 [1] : vector<8x32xf32> to vector<8xf32>
    %179 = vector.shape_cast %178 : vector<8xf32> to vector<8x1xf32>
    %cst_62 = arith.constant 3.200000e+01 : f32
    %180 = vector.broadcast %cst_62 : f32 to vector<8x1xf32>
    %181 = arith.divf %179, %180 : vector<8x1xf32>
    %182 = vector.broadcast %174 : vector<8x1xf32> to vector<8x32xf32>
    %183 = arith.subf %160, %182 : vector<8x32xf32>
    %cst_63 = arith.constant 9.99999997E-7 : f32
    %184 = vector.broadcast %cst_63 : f32 to vector<8x1xf32>
    %185 = arith.addf %181, %184 : vector<8x1xf32>
    %186 = math.rsqrt %185 : vector<8x1xf32>
    %187 = vector.broadcast %186 : vector<8x1xf32> to vector<8x32xf32>
    %188 = arith.mulf %183, %187 : vector<8x32xf32>
    %189 = vector.broadcast %163 : vector<1x32xf32> to vector<8x32xf32>
    %190 = arith.mulf %188, %189 : vector<8x32xf32>
    %191 = vector.broadcast %164 : vector<1x32xf32> to vector<8x32xf32>
    %192 = arith.addf %190, %191 : vector<8x32xf32>
    %193 = arith.truncf %192 : vector<8x32xf32> to vector<8x32xbf16>
    %c1_64 = arith.constant 1 : index
    %c0_65 = arith.constant 0 : index
    %c0_66 = arith.constant 0 : index
    %194 = vector.load %arg5[%c1_64, %c0_65, %c0_66] : memref<2x32x96xbf16, #tpu.memory_space<vmem>>, vector<1x32x96xbf16>
    %195 = vector.shape_cast %194 : vector<1x32x96xbf16> to vector<32x96xbf16>
    %cst_67 = arith.constant dense<0.000000e+00> : vector<8x96xf32>
    %196 = tpu.matmul %193, %195, %cst_67 {dimension_numbers = #tpu.dot_dimension_numbers<[1], [0], [0], [1], [0, 0, 1, 1], [], []>} : vector<8x32xbf16>, vector<32x96xbf16>, vector<8x96xf32> -> vector<8x96xf32>
    %c1_68 = arith.constant 1 : index
    %c0_69 = arith.constant 0 : index
    %c0_70 = arith.constant 0 : index
    %197 = vector.load %arg6[%c1_68, %c0_69, %c0_70] : memref<2x1x96xf32, #tpu.memory_space<vmem>>, vector<1x1x96xf32>
    %198 = vector.shape_cast %197 : vector<1x1x96xf32> to vector<1x96xf32>
    %199 = vector.broadcast %198 : vector<1x96xf32> to vector<8x96xf32>
    %200 = arith.addf %196, %199 : vector<8x96xf32>
    %201 = vector.extract_strided_slice %200 {offsets = [0, 0], sizes = [8, 16], strides = [1, 1]} : vector<8x96xf32> to vector<8x16xf32>
    %202 = vector.extract_strided_slice %200 {offsets = [0, 32], sizes = [8, 16], strides = [1, 1]} : vector<8x96xf32> to vector<8x16xf32>
    %203 = vector.extract_strided_slice %200 {offsets = [0, 64], sizes = [8, 16], strides = [1, 1]} : vector<8x96xf32> to vector<8x16xf32>
    %204 = arith.truncf %201 : vector<8x16xf32> to vector<8x16xbf16>
    %205 = arith.truncf %202 : vector<8x16xf32> to vector<8x16xbf16>
    %cst_71 = arith.constant dense<0.000000e+00> : vector<8x8xf32>
    %206 = tpu.matmul %204, %205, %cst_71 {dimension_numbers = #tpu.dot_dimension_numbers<[1], [1], [0], [0], [0, 0, 1, 0], [], []>} : vector<8x16xbf16>, vector<8x16xbf16>, vector<8x8xf32> -> vector<8x8xf32>
    %cst_72 = arith.constant 2.500000e-01 : f32
    %207 = vector.broadcast %cst_72 : f32 to vector<8x8xf32>
    %208 = arith.mulf %206, %207 : vector<8x8xf32>
    %cst_73 = arith.constant -1.000000e+30 : f32
    %209 = vector.shape_cast %8 : vector<1x8xi1> to vector<1x8xi1>
    %210 = vector.broadcast %209 : vector<1x8xi1> to vector<8x8xi1>
    %211 = vector.broadcast %cst_73 : f32 to vector<8x8xf32>
    %212 = arith.select %210, %211, %208 : vector<8x8xi1>, vector<8x8xf32>
    %cst_74 = arith.constant dense<0xFF800000> : vector<8xf32>
    %213 = vector.multi_reduction <maximumf>, %212, %cst_74 [1] : vector<8x8xf32> to vector<8xf32>
    %214 = vector.shape_cast %213 : vector<8xf32> to vector<8x1xf32>
    %215 = vector.broadcast %214 : vector<8x1xf32> to vector<8x8xf32>
    %216 = arith.subf %212, %215 : vector<8x8xf32>
    %217 = math.exp %216 : vector<8x8xf32>
    %cst_75 = arith.constant dense<0.000000e+00> : vector<8xf32>
    %218 = vector.multi_reduction <add>, %217, %cst_75 [1] : vector<8x8xf32> to vector<8xf32>
    %219 = vector.shape_cast %218 : vector<8xf32> to vector<8x1xf32>
    %220 = tpu.reciprocal %219 {approx = true} : vector<8x1xf32> -> vector<8x1xf32>
    %221 = vector.broadcast %220 : vector<8x1xf32> to vector<8x8xf32>
    %222 = arith.mulf %217, %221 : vector<8x8xf32>
    %223 = arith.truncf %222 : vector<8x8xf32> to vector<8x8xbf16>
    %224 = arith.truncf %203 : vector<8x16xf32> to vector<8x16xbf16>
    %cst_76 = arith.constant dense<0.000000e+00> : vector<8x16xf32>
    %225 = tpu.matmul %223, %224, %cst_76 {dimension_numbers = #tpu.dot_dimension_numbers<[1], [0], [0], [1], [0, 0, 1, 1], [], []>} : vector<8x8xbf16>, vector<8x16xbf16>, vector<8x16xf32> -> vector<8x16xf32>
    %226 = vector.extract_strided_slice %200 {offsets = [0, 16], sizes = [8, 16], strides = [1, 1]} : vector<8x96xf32> to vector<8x16xf32>
    %227 = vector.extract_strided_slice %200 {offsets = [0, 48], sizes = [8, 16], strides = [1, 1]} : vector<8x96xf32> to vector<8x16xf32>
    %228 = vector.extract_strided_slice %200 {offsets = [0, 80], sizes = [8, 16], strides = [1, 1]} : vector<8x96xf32> to vector<8x16xf32>
    %229 = arith.truncf %226 : vector<8x16xf32> to vector<8x16xbf16>
    %230 = arith.truncf %227 : vector<8x16xf32> to vector<8x16xbf16>
    %cst_77 = arith.constant dense<0.000000e+00> : vector<8x8xf32>
    %231 = tpu.matmul %229, %230, %cst_77 {dimension_numbers = #tpu.dot_dimension_numbers<[1], [1], [0], [0], [0, 0, 1, 0], [], []>} : vector<8x16xbf16>, vector<8x16xbf16>, vector<8x8xf32> -> vector<8x8xf32>
    %cst_78 = arith.constant 2.500000e-01 : f32
    %232 = vector.broadcast %cst_78 : f32 to vector<8x8xf32>
    %233 = arith.mulf %231, %232 : vector<8x8xf32>
    %cst_79 = arith.constant -1.000000e+30 : f32
    %234 = vector.shape_cast %8 : vector<1x8xi1> to vector<1x8xi1>
    %235 = vector.broadcast %234 : vector<1x8xi1> to vector<8x8xi1>
    %236 = vector.broadcast %cst_79 : f32 to vector<8x8xf32>
    %237 = arith.select %235, %236, %233 : vector<8x8xi1>, vector<8x8xf32>
    %cst_80 = arith.constant dense<0xFF800000> : vector<8xf32>
    %238 = vector.multi_reduction <maximumf>, %237, %cst_80 [1] : vector<8x8xf32> to vector<8xf32>
    %239 = vector.shape_cast %238 : vector<8xf32> to vector<8x1xf32>
    %240 = vector.broadcast %239 : vector<8x1xf32> to vector<8x8xf32>
    %241 = arith.subf %237, %240 : vector<8x8xf32>
    %242 = math.exp %241 : vector<8x8xf32>
    %cst_81 = arith.constant dense<0.000000e+00> : vector<8xf32>
    %243 = vector.multi_reduction <add>, %242, %cst_81 [1] : vector<8x8xf32> to vector<8xf32>
    %244 = vector.shape_cast %243 : vector<8xf32> to vector<8x1xf32>
    %245 = tpu.reciprocal %244 {approx = true} : vector<8x1xf32> -> vector<8x1xf32>
    %246 = vector.broadcast %245 : vector<8x1xf32> to vector<8x8xf32>
    %247 = arith.mulf %242, %246 : vector<8x8xf32>
    %248 = arith.truncf %247 : vector<8x8xf32> to vector<8x8xbf16>
    %249 = arith.truncf %228 : vector<8x16xf32> to vector<8x16xbf16>
    %cst_82 = arith.constant dense<0.000000e+00> : vector<8x16xf32>
    %250 = tpu.matmul %248, %249, %cst_82 {dimension_numbers = #tpu.dot_dimension_numbers<[1], [0], [0], [1], [0, 0, 1, 1], [], []>} : vector<8x8xbf16>, vector<8x16xbf16>, vector<8x16xf32> -> vector<8x16xf32>
    %251 = tpu.concatenate %225, %250 in 1 : vector<8x16xf32>, vector<8x16xf32> -> vector<8x32xf32>
    %252 = arith.truncf %251 : vector<8x32xf32> to vector<8x32xbf16>
    %c1_83 = arith.constant 1 : index
    %c0_84 = arith.constant 0 : index
    %c0_85 = arith.constant 0 : index
    %253 = vector.load %arg7[%c1_83, %c0_84, %c0_85] : memref<2x32x32xbf16, #tpu.memory_space<vmem>>, vector<1x32x32xbf16>
    %254 = vector.shape_cast %253 : vector<1x32x32xbf16> to vector<32x32xbf16>
    %cst_86 = arith.constant dense<0.000000e+00> : vector<8x32xf32>
    %255 = tpu.matmul %252, %254, %cst_86 {dimension_numbers = #tpu.dot_dimension_numbers<[1], [0], [0], [1], [0, 0, 1, 1], [], []>} : vector<8x32xbf16>, vector<32x32xbf16>, vector<8x32xf32> -> vector<8x32xf32>
    %256 = vector.broadcast %167 : vector<1x32xf32> to vector<8x32xf32>
    %257 = arith.addf %255, %256 : vector<8x32xf32>
    %258 = vector.broadcast %169 : vector<1x32xf32> to vector<8x32xf32>
    %259 = arith.mulf %258, %257 : vector<8x32xf32>
    %260 = arith.addf %160, %259 : vector<8x32xf32>
    %cst_87 = arith.constant dense<0.000000e+00> : vector<8xf32>
    %261 = vector.multi_reduction <add>, %260, %cst_87 [1] : vector<8x32xf32> to vector<8xf32>
    %262 = vector.shape_cast %261 : vector<8xf32> to vector<8x1xf32>
    %cst_88 = arith.constant 3.200000e+01 : f32
    %263 = vector.broadcast %cst_88 : f32 to vector<8x1xf32>
    %264 = arith.divf %262, %263 : vector<8x1xf32>
    %265 = vector.broadcast %264 : vector<8x1xf32> to vector<8x32xf32>
    %266 = arith.subf %260, %265 : vector<8x32xf32>
    %267 = arith.mulf %266, %266 : vector<8x32xf32>
    %cst_89 = arith.constant dense<0.000000e+00> : vector<8xf32>
    %268 = vector.multi_reduction <add>, %267, %cst_89 [1] : vector<8x32xf32> to vector<8xf32>
    %269 = vector.shape_cast %268 : vector<8xf32> to vector<8x1xf32>
    %cst_90 = arith.constant 3.200000e+01 : f32
    %270 = vector.broadcast %cst_90 : f32 to vector<8x1xf32>
    %271 = arith.divf %269, %270 : vector<8x1xf32>
    %272 = vector.broadcast %264 : vector<8x1xf32> to vector<8x32xf32>
    %273 = arith.subf %260, %272 : vector<8x32xf32>
    %cst_91 = arith.constant 9.99999997E-7 : f32
    %274 = vector.broadcast %cst_91 : f32 to vector<8x1xf32>
    %275 = arith.addf %271, %274 : vector<8x1xf32>
    %276 = math.rsqrt %275 : vector<8x1xf32>
    %277 = vector.broadcast %276 : vector<8x1xf32> to vector<8x32xf32>
    %278 = arith.mulf %273, %277 : vector<8x32xf32>
    %279 = vector.broadcast %165 : vector<1x32xf32> to vector<8x32xf32>
    %280 = arith.mulf %278, %279 : vector<8x32xf32>
    %281 = vector.broadcast %166 : vector<1x32xf32> to vector<8x32xf32>
    %282 = arith.addf %280, %281 : vector<8x32xf32>
    %283 = arith.truncf %282 : vector<8x32xf32> to vector<8x32xbf16>
    %c1_92 = arith.constant 1 : index
    %c0_93 = arith.constant 0 : index
    %c0_94 = arith.constant 0 : index
    %284 = vector.load %arg8[%c1_92, %c0_93, %c0_94] : memref<2x32x128xbf16, #tpu.memory_space<vmem>>, vector<1x32x128xbf16>
    %285 = vector.shape_cast %284 : vector<1x32x128xbf16> to vector<32x128xbf16>
    %cst_95 = arith.constant dense<0.000000e+00> : vector<8x128xf32>
    %286 = tpu.matmul %283, %285, %cst_95 {dimension_numbers = #tpu.dot_dimension_numbers<[1], [0], [0], [1], [0, 0, 1, 1], [], []>} : vector<8x32xbf16>, vector<32x128xbf16>, vector<8x128xf32> -> vector<8x128xf32>
    %c1_96 = arith.constant 1 : index
    %c0_97 = arith.constant 0 : index
    %c0_98 = arith.constant 0 : index
    %287 = vector.load %arg9[%c1_96, %c0_97, %c0_98] : memref<2x1x128xf32, #tpu.memory_space<vmem>>, vector<1x1x128xf32>
    %288 = vector.shape_cast %287 : vector<1x1x128xf32> to vector<1x128xf32>
    %289 = vector.broadcast %288 : vector<1x128xf32> to vector<8x128xf32>
    %290 = arith.addf %286, %289 : vector<8x128xf32>
    %291 = arith.mulf %290, %290 : vector<8x128xf32>
    %292 = arith.mulf %290, %291 : vector<8x128xf32>
    %cst_99 = arith.constant 4.471500e-02 : f32
    %293 = vector.broadcast %cst_99 : f32 to vector<8x128xf32>
    %294 = arith.mulf %293, %292 : vector<8x128xf32>
    %295 = arith.addf %290, %294 : vector<8x128xf32>
    %cst_100 = arith.constant 0.797884583 : f32
    %296 = vector.broadcast %cst_100 : f32 to vector<8x128xf32>
    %297 = arith.mulf %296, %295 : vector<8x128xf32>
    %298 = math.tanh %297 : vector<8x128xf32>
    %cst_101 = arith.constant 1.000000e+00 : f32
    %299 = vector.broadcast %cst_101 : f32 to vector<8x128xf32>
    %300 = arith.addf %299, %298 : vector<8x128xf32>
    %cst_102 = arith.constant 5.000000e-01 : f32
    %301 = vector.broadcast %cst_102 : f32 to vector<8x128xf32>
    %302 = arith.mulf %301, %300 : vector<8x128xf32>
    %303 = arith.mulf %290, %302 : vector<8x128xf32>
    %304 = arith.truncf %303 : vector<8x128xf32> to vector<8x128xbf16>
    %c1_103 = arith.constant 1 : index
    %c0_104 = arith.constant 0 : index
    %c0_105 = arith.constant 0 : index
    %305 = vector.load %arg10[%c1_103, %c0_104, %c0_105] : memref<2x128x32xbf16, #tpu.memory_space<vmem>>, vector<1x128x32xbf16>
    %306 = vector.shape_cast %305 : vector<1x128x32xbf16> to vector<128x32xbf16>
    %cst_106 = arith.constant dense<0.000000e+00> : vector<8x32xf32>
    %307 = tpu.matmul %304, %306, %cst_106 {dimension_numbers = #tpu.dot_dimension_numbers<[1], [0], [0], [1], [0, 0, 1, 1], [], []>} : vector<8x128xbf16>, vector<128x32xbf16>, vector<8x32xf32> -> vector<8x32xf32>
    %308 = vector.broadcast %168 : vector<1x32xf32> to vector<8x32xf32>
    %309 = arith.addf %307, %308 : vector<8x32xf32>
    %310 = vector.broadcast %170 : vector<1x32xf32> to vector<8x32xf32>
    %311 = arith.mulf %310, %309 : vector<8x32xf32>
    %312 = arith.addf %260, %311 : vector<8x32xf32>
    %c0_107 = arith.constant 0 : index
    %c0_108 = arith.constant 0 : index
    %c0_109 = arith.constant 0 : index
    %313 = vector.load %arg11[%c0_107, %c0_108, %c0_109] : memref<1x8x32xf32, #tpu.memory_space<vmem>>, vector<1x8x32xf32>
    %314 = vector.shape_cast %313 : vector<1x8x32xf32> to vector<8x32xf32>
    %315 = vector.shape_cast %312 : vector<8x32xf32> to vector<1x8x32xf32>
    tpu.vector_store %arg11[%c0_107, %c0_108, %c0_109], %315 {strides = array<i32>} : memref<1x8x32xf32, #tpu.memory_space<vmem>>, vector<1x8x32xf32>,
    return
  }
  func.func @transform_0(%arg0: i32) -> (i32, i32, i32) {
    %c0_i32 = arith.constant 0 : i32
    %c0_i32_0 = arith.constant 0 : i32
    %c0_i32_1 = arith.constant 0 : i32
    return %arg0, %c0_i32, %c0_i32_0 : i32, i32, i32
  }
  func.func @transform_1(%arg0: i32) -> (i32, i32) {
    %c0_i32 = arith.constant 0 : i32
    %c0_i32_0 = arith.constant 0 : i32
    %c0_i32_1 = arith.constant 0 : i32
    return %c0_i32, %c0_i32_0 : i32, i32
  }
  func.func @transform_2(%arg0: i32) -> (i32, i32) {
    %c0_i32 = arith.constant 0 : i32
    %c0_i32_0 = arith.constant 0 : i32
    %c0_i32_1 = arith.constant 0 : i32
    return %c0_i32, %c0_i32_0 : i32, i32
  }
  func.func @transform_3(%arg0: i32) -> (i32, i32, i32) {
    %c0_i32 = arith.constant 0 : i32
    %c0_i32_0 = arith.constant 0 : i32
    %c0_i32_1 = arith.constant 0 : i32
    %c0_i32_2 = arith.constant 0 : i32
    return %c0_i32, %c0_i32_0, %c0_i32_1 : i32, i32, i32
  }
  func.func @transform_4(%arg0: i32) -> (i32, i32, i32) {
    %c0_i32 = arith.constant 0 : i32
    %c0_i32_0 = arith.constant 0 : i32
    %c0_i32_1 = arith.constant 0 : i32
    %c0_i32_2 = arith.constant 0 : i32
    return %c0_i32, %c0_i32_0, %c0_i32_1 : i32, i32, i32
  }
  func.func @transform_5(%arg0: i32) -> (i32, i32, i32) {
    %c0_i32 = arith.constant 0 : i32
    %c0_i32_0 = arith.constant 0 : i32
    %c0_i32_1 = arith.constant 0 : i32
    %c0_i32_2 = arith.constant 0 : i32
    return %c0_i32, %c0_i32_0, %c0_i32_1 : i32, i32, i32
  }
  func.func @transform_6(%arg0: i32) -> (i32, i32, i32) {
    %c0_i32 = arith.constant 0 : i32
    %c0_i32_0 = arith.constant 0 : i32
    %c0_i32_1 = arith.constant 0 : i32
    %c0_i32_2 = arith.constant 0 : i32
    return %c0_i32, %c0_i32_0, %c0_i32_1 : i32, i32, i32
  }
  func.func @transform_7(%arg0: i32) -> (i32, i32, i32) {
    %c0_i32 = arith.constant 0 : i32
    %c0_i32_0 = arith.constant 0 : i32
    %c0_i32_1 = arith.constant 0 : i32
    %c0_i32_2 = arith.constant 0 : i32
    return %c0_i32, %c0_i32_0, %c0_i32_1 : i32, i32, i32
  }
  func.func @transform_8(%arg0: i32) -> (i32, i32, i32) {
    %c0_i32 = arith.constant 0 : i32
    %c0_i32_0 = arith.constant 0 : i32
    %c0_i32_1 = arith.constant 0 : i32
    %c0_i32_2 = arith.constant 0 : i32
    return %c0_i32, %c0_i32_0, %c0_i32_1 : i32, i32, i32
  }
  func.func @transform_9(%arg0: i32) -> (i32, i32, i32) {
    %c0_i32 = arith.constant 0 : i32
    %c0_i32_0 = arith.constant 0 : i32
    %c0_i32_1 = arith.constant 0 : i32
    %c0_i32_2 = arith.constant 0 : i32
    return %c0_i32, %c0_i32_0, %c0_i32_1 : i32, i32, i32
  }
  func.func @transform_10(%arg0: i32) -> (i32, i32, i32) {
    %c0_i32 = arith.constant 0 : i32
    %c0_i32_0 = arith.constant 0 : i32
    %c0_i32_1 = arith.constant 0 : i32
    return %arg0, %c0_i32, %c0_i32_0 : i32, i32, i32
  }
}

</mosaic_0001>

<bundles_post_ra>
// kernel: dinov2_forward.1
= control target key start
LH: loop header
LB: loop body
LE: loop exit
PB: predicated region body
PF: predicated region fallthrough
CT: control target
= control target key end

     0   :  { %s2681_s13 = smov 0   ;;  %s3168_s0 = inlined_call_operand.vmem [shape: bf16[2,8,640], index: 0, kind: input, shape index: {}]   ;;  %s3169_s1 = inlined_call_operand.vmem [shape: bf16[640,32], index: 1, kind: input, shape index: {}]   ;;  %s3170_s2 = inlined_call_operand.vmem [shape: f32[8,32], index: 2, kind: input, shape index: {}]   ;;  %s3171_s3 = inlined_call_operand.vmem [shape: f32[2,8,32], index: 3, kind: input, shape index: {}]   ;;  %s3172_s4 = inlined_call_operand.vmem [shape: bf16[2,32,96], index: 4, kind: input, shape index: {}]   ;;  %s3173_s5 = inlined_call_operand.vmem [shape: f32[2,1,96], index: 5, kind: input, shape index: {}]   ;;  %s3174_s6 = inlined_call_operand.vmem [shape: bf16[2,32,32], index: 6, kind: input, shape index: {}]   ;;  %s3175_s7 = inlined_call_operand.vmem [shape: bf16[2,32,128], index: 7, kind: input, shape index: {}]   ;;  %s3176_s8 = inlined_call_operand.vmem [shape: f32[2,1,128], index: 8, kind: input, shape index: {}]   ;;  %s3177_s9 = inlined_call_operand.vmem [shape: bf16[2,128,32], index: 9, kind: input, shape index: {}]   ;;  %s3178_s10 = inlined_call_operand.vmem [shape: f32[2,8,32], index: 10, kind: output, shape index: {}]  }
   0x1 LB: > { %s2100_s14 = sadd.s32 4294967295, %s2616_s13   ;;  %p2104_p0 = scmp.ge.s32.totalorder %s2616_s13, 1  ;;  %s2616_s13 = sphi %s2681_s13, %s20_s13  }
   0x2   : > { %p312_p1 = scmp.lt.s32.totalorder %s2616_s13, 3 }
   0x4   : > { %p313_p2 = pnand %p2104_p0, %p312_p1 }
   0x5   : > { %p349_p3 = scmp.lt.s32.totalorder (!%p313_p2), %s2100_s14, 1  ;;  %s2620_s19 = smov (!%p313_p2), 64  }
   0x6   : > { %316 = sbr.rel (%p313_p2) target bundleno = 6080 (0x17c0), region = 60  ;;  %s2621_s20 = smov (!%p313_p2), 96  }
   0x7   : > { %s2622_s21 = smov (!%p313_p2), 80   ;;  %s2623_s23 = smov (!%p313_p2), 112  }
   0x8   : > { %s2624_s24 = smov (!%p313_p2), 48  }
   0xb   : > { %v2509_v0 = vld [vmem:[%s3169_s1 + $0x78] sm:$0xff]   ;;  %v2513_v4 = vld [vmem:[%s3169_s1 + $0x70] sm:$0xff]   ;;  %v2517_v8 = vld [vmem:[%s3169_s1 + $0x68] sm:$0xff]   ;;  %s3180_s14 = smov (!%p349_p3, %s2100_s14), 1  ;;  %v2618_v35 = vmov 0.0   ;;  %vm2619_vm0 = vmmov 0  }
   0xc   : > { %v2510_v1 = vld [vmem:[%s3169_s1 + $0x38] sm:$0xff]   ;;  %2231 = vmatprep.subr.bf16.mxu0 %v2509_v0  ;;  %v2514_v5 = vld [vmem:[%s3169_s1 + $0x30] sm:$0xff]   ;;  %v2518_v9 = vld [vmem:[%s3169_s1 + $0x28] sm:$0xff]   ;;  %s2492_s29 = smul.u32 20, %s3180_s14  ;;  %vm825_vm1 = vcmask 261120   ;;  %vm921_vm2 = vcmask 130048  }
   0xd   : > { %v2511_v2 = vld [vmem:[%s3169_s1 + $0xf8] sm:$0xff]   ;;  %2232 = vmatpush3.bf16.msra.mxu0 %v2510_v1  ;;  %v2515_v6 = vld [vmem:[%s3169_s1 + $0xf0] sm:$0xff]   ;;  %v2519_v10 = vld [vmem:[%s3169_s1 + $0xe8] sm:$0xff]   ;;  %vm990_vm3 = vcmask 1043456   ;;  %vm972_vm5 = vcmask 64512   ;;  %s2106_s25 = sshll.u32 %s3180_s14, 3 }
   0xe   : > { %v2512_v3 = vld [vmem:[%s3169_s1 + $0xb8] sm:$0xff]   ;;  %2253 = vmatprep.subr.bf16.mxu1 %v2511_v2  ;;  %2233 = vmatprep.subr.bf16.mxu0 %v2513_v4  ;;  %v2516_v7 = vld [vmem:[%s3169_s1 + $0xb0] sm:$0xff]   ;;  %v2520_v11 = vld [vmem:[%s3169_s1 + $0xa8] sm:$0xff]   ;;  %s2786_s22 = scalar_lea.vmem %s3168_s0, %s2492_s29  ;;  %s2625_s29 = smov 16  }
   0xf   : > { %2254 = vmatpush3.bf16.msra.mxu1 %v2512_v3  ;;  %v2521_v12 = vld [vmem:[%s3169_s1 + $0x60] sm:$0xff]   ;;  %v2525_v16 = vld [vmem:[%s3169_s1 + $0x58] sm:$0xff]   ;;  %v2529_v20 = vld [vmem:[%s3169_s1 + $0x50] sm:$0xff]   ;;  %s357_s28 = scalar_lea.vmem %s3178_s10, %s2106_s25 }
  0x10   : > { %2255 = vmatprep.subr.bf16.mxu1 %v2515_v6  ;;  %v2522_v13 = vld [vmem:[%s3169_s1 + $0x20] sm:$0xff]   ;;  %v2526_v17 = vld [vmem:[%s3169_s1 + $0x18] sm:$0xff]   ;;  %v2530_v21 = vld [vmem:[%s3169_s1 + $0x10] sm:$0xff]  }
  0x11   : > { %2234 = vmatpush3.bf16.msra.mxu0 %v2514_v5  ;;  %v2523_v14 = vld [vmem:[%s3169_s1 + $0xe0] sm:$0xff]   ;;  %v2527_v18 = vld [vmem:[%s3169_s1 + $0xd8] sm:$0xff]   ;;  %v2531_v22 = vld [vmem:[%s3169_s1 + $0xd0] sm:$0xff]  }
  0x12   : > { %2235 = vmatprep.subr.bf16.mxu0 %v2517_v8  ;;  %v2524_v15 = vld [vmem:[%s3169_s1 + $0xa0] sm:$0xff]   ;;  %v2528_v19 = vld [vmem:[%s3169_s1 + $0x98] sm:$0xff]   ;;  %v2532_v23 = vld [vmem:[%s3169_s1 + $0x90] sm:$0xff]  }
  0x13   : > { %2256 = vmatpush3.bf16.msra.mxu1 %v2516_v7  ;;  %v2533_v24 = vld [vmem:[%s3169_s1 + $0x48] sm:$0xff]   ;;  %v2537_v28 = vld [vmem:[%s3169_s1 + $0x40] sm:$0xff]   ;;  %v2546_v39 = vld [vmem:[%s3169_s1 + $0x138] sm:$0xff]  }
  0x14   : > { %2257 = vmatprep.subr.bf16.mxu1 %v2519_v10  ;;  %v2534_v25 = vld [vmem:[%s3169_s1 + $0x8] sm:$0xff]   ;;  %v2538_v29 = vld [vmem:[%s3169_s1] sm:$0xff]   ;;  %v2547_v40 = vld [vmem:[%s3169_s1 + $0x130] sm:$0xff]  }
  0x15   : > { %2236 = vmatpush3.bf16.msra.mxu0 %v2518_v9  ;;  %v2535_v26 = vld [vmem:[%s3169_s1 + $0xc8] sm:$0xff]   ;;  %v2539_v30 = vld [vmem:[%s3169_s1 + $0xc0] sm:$0xff]   ;;  %v2550_v43 = vld [vmem:[%s3169_s1 + $0x118] sm:$0xff]  }
  0x16   : > { %2237 = vmatprep.subr.bf16.mxu0 %v2521_v12  ;;  %v2536_v27 = vld [vmem:[%s3169_s1 + $0x88] sm:$0xff]   ;;  %v359_v31 = vld [vmem:[%s2786_s22] sm:$0xff]  ;;  %v2551_v44 = vld [vmem:[%s3169_s1 + $0x110] sm:$0xff]  }
  0x17   : > { %2258 = vmatpush3.bf16.msra.mxu1 %v2520_v11  ;;  %v2107_v32 = vcombine.low %v359_v31, %v359_v31  ;;  %v2108_v33 = vcombine.high %v359_v31, %v359_v31  ;;  %v2543_v34 = vld [vmem:[%s3169_s1 + $0x80] sm:$0xff]   ;;  %v360_v36 = vld [vmem:[%s2786_s22 + $0x8] sm:$0xff]  ;;  %v2542_v47 = vld [vmem:[%s2786_s22 + $0x10] ss:$0 sps:$4 sm:$0xff]  }
  0x18   : > { %2259 = vmatprep.subr.bf16.mxu1 %v2523_v14  ;;  %v2109_v37 = vcombine.low %v360_v36, %v360_v36  ;;  %v2110_v38 = vcombine.high %v360_v36, %v360_v36  ;;  %v2548_v41 = vld [vmem:[%s3169_s1 + $0x128] sm:$0xff]   ;;  %v2549_v42 = vld [vmem:[%s3169_s1 + $0x120] sm:$0xff]  }
  0x19   : > { %2238 = vmatpush3.bf16.msra.mxu0 %v2522_v13  ;;  %733 = vmatprep.mubr.bf16.mxu0 %v2108_v33  ;;  %v2552_v45 = vld [vmem:[%s3169_s1 + $0x108] sm:$0xff]   ;;  %v2553_v46 = vld [vmem:[%s3169_s1 + $0x100] sm:$0xff]   ;;  %v821_v13 = vlaneseq }
  0x1a   : > { %2239 = vmatprep.subr.bf16.mxu0 %v2525_v16  ;;  %773 = vmatprep.mubr.bf16.mxu1 %v2110_v38  ;;  %v442_v57 = vld [vmem:[%s3170_s2] sm:$0xff]  ;;  %v2554_v8 = vld [vmem:[%s3172_s4 + $0x8] sm:$0xff]  }
  0x1b   : > { %2260 = vmatpush3.bf16.msra.mxu1 %v2524_v15  ;;  %v2555_v9 = vld [vmem:[%s3172_s4] sm:$0xff]   ;;  %v2857_v14 = vshrl.u32 %v821_v13, 7 }
  0x1c   : > { %2261 = vmatprep.subr.bf16.mxu1 %v2527_v18  ;;  %v2863_v16 = vld [vmem:[%s3171_s3] sm:$0xff] }
  0x1d   : > { %2240 = vmatpush3.bf16.msra.mxu0 %v2526_v17  ;;  %v842_v15 = vsub.s32 0, %v2857_v14  ;;  %v847_v17 = vsub.s32 1, %v2857_v14 }
  0x1e   : > { %2241 = vmatprep.subr.bf16.mxu0 %v2529_v20 }
  0x1f   : > { %2262 = vmatpush3.bf16.msra.mxu1 %v2528_v19  ;;  %v843_v18 = vrot.slane %v2863_v16, %v842_v15 }
  0x20   : > { %2263 = vmatprep.subr.bf16.mxu1 %v2531_v22 }
  0x21   : > { %2242 = vmatpush3.bf16.msra.mxu0 %v2530_v21  ;;  %v848_v21 = vrot.slane %v2863_v16, %v847_v17 }
  0x22   : > { %2243 = vmatprep.subr.bf16.mxu0 %v2533_v24 }
  0x23   : > { %2264 = vmatpush3.bf16.msra.mxu1 %v2532_v23 }
  0x24   : > { %2265 = vmatprep.subr.bf16.mxu1 %v2535_v26 }
  0x25   : > { %2244 = vmatpush3.bf16.msra.mxu0 %v2534_v25  ;;  %v2152_v25 = vld [vmem:[%s3173_s5] ss:$0 sm:$0xff] }
  0x26   : > { %2245 = vmatprep.subr.bf16.mxu0 %v2537_v28 }
  0x27   : > { %2266 = vmatpush3.bf16.msra.mxu1 %v2536_v27 }
  0x28   : > { %2267 = vmatprep.subr.bf16.mxu1 %v2539_v30 }
  0x29   : > { %2246 = vmatpush3.bf16.msra.mxu0 %v2538_v29 }
  0x2a   : > { %2336 = vmatprep.subr.bf16.mxu0 %v2618_v35 }
  0x2b   : > { %2268 = vmatpush3.bf16.msra.mxu1 %v2543_v34 }
  0x2c   : > { %734 = vmatmul.mubr.bf16.vlgmr.msra.gmra.mxu0 %v2107_v32  ;;  %2356 = vmatprep.subr.bf16.mxu1 %v2618_v35 }
  0x2d   : > { %2337 = vmatpush3.bf16.msra.mxu0 %v2546_v39  ;;  %2352 = vmatprep.mubr.msk.bf16.mxu0 %vm2619_vm0, %v2618_v35 }
  0x2e   : > { %774 = vmatmul.mubr.bf16.vlgmr.msra.gmra.mxu1 %v2109_v37  ;;  %2338 = vmatprep.subr.bf16.mxu0 %v2618_v35  ;;  %v2892_v37 = vand.u32 127, %v821_v13 }
  0x2f   : > { %2360 = vmatprep.mubr.msk.bf16.mxu1 %vm2619_vm0, %v2618_v35  ;;  %2357 = vmatpush3.bf16.msra.mxu1 %v2554_v8 }
  0x30   : > { %2358 = vmatprep.subr.bf16.mxu1 %v2618_v35  ;;  %vm823_vm4 = vcmp.ge.s32.totalorder %v2892_v37, 5 }
  0x31   : > { %2339 = vmatpush3.bf16.msra.mxu0 %v2547_v40 }
  0x32   : > { %2340 = vmatprep.subr.bf16.mxu0 %v2618_v35 }
  0x33   : > { %2359 = vmatpush3.bf16.msra.mxu1 %v2555_v9 }
  0x34   : > { %2364 = vmatprep.subr.bf16.mxu1 %v2618_v35 }
  0x35   : > { %2341 = vmatpush3.bf16.msra.mxu0 %v2548_v41 }
  0x36   : > { %2342 = vmatprep.subr.bf16.mxu0 %v2618_v35 }
  0x39   : > { %2343 = vmatpush3.bf16.msra.mxu0 %v2549_v42 }
  0x3a   : > { %2344 = vmatprep.subr.bf16.mxu0 %v2618_v35 }
  0x3d   : > { %2345 = vmatpush3.bf16.msra.mxu0 %v2550_v43 }
  0x3e   : > { %2346 = vmatprep.subr.bf16.mxu0 %v2618_v35 }
  0x41   : > { %2347 = vmatpush3.bf16.msra.mxu0 %v2551_v44 }
  0x42   : > { %2348 = vmatprep.subr.bf16.mxu0 %v2618_v35 }
  0x45   : > { %2349 = vmatpush3.bf16.msra.mxu0 %v2552_v45 }
  0x46   : > { %2350 = vmatprep.subr.bf16.mxu0 %v2618_v35 }
  0x49   : > { %2351 = vmatpush3.bf16.msra.mxu0 %v2553_v46 }
  0x4a   : > { %2424 = vmatprep.subr.bf16.mxu0 %v2618_v35 }
  0x4c   : > { %2353 = vmatmul.mubr.bf16.vlgmr.msra.gmra.mxu0 %v2542_v47 }
  0x4d   : > { %2428 = vmatprep.mubr.msk.bf16.mxu0 %vm2619_vm0, %v2618_v35 }
  0xec   : > { %v2247_v48 = vpop.f32.mrf.mxu0 }
  0xee   : > { %v2248_v49 = vpop.f32.mrf.mxu0  ;;  %v2269_v50 = vpop.f32.mrf.mxu1 }
  0xef   : > { %v2249_v56 = vadd.f32 %v2248_v49, %v2247_v48 }
  0xf0   : > { %v2250_v51 = vpop.f32.mrf.mxu0  ;;  %v2270_v52 = vpop.f32.mrf.mxu1 }
  0xf1   : > { %v736_v58 = vadd.f32 %v2249_v56, %v442_v57  ;;  %v2271_v59 = vadd.f32 %v2270_v52, %v2269_v50 }
  0xf2   : > { %v2251_v53 = vpop.f32.mrf.mxu0  ;;  %v2272_v54 = vpop.f32.mrf.mxu1 }
  0xf3   : > { %v776_v60 = vadd.f32 %v2271_v59, %v736_v58 }
  0xf4   : > { %v2273_v55 = vpop.f32.mrf.mxu1 }
 0x10c   : > { %v815_v61 = vpop.f32.mrf.mxu0 }
 0x10d   : > { %v2843_v62 = vadd.f32 %v815_v61, %v776_v60 }
 0x10e   : > { %v2354_v63 = vpop.f32.mrf.mxu0 }
 0x10f   : > { %v826_v0 = vsel %vm825_vm1, %v2843_v62, 0.0 }
 0x110   : > { %v818_v1 = vpop.f32.mrf.mxu0  ;;  %827 = vadd.xlane.f32.xlu0 %v826_v0 }
 0x112   : > { %v2355_v2 = vpop.f32.mrf.mxu0 }
 0x199   : > { %v828_v3 = vpop.xlane.xlu0 %827 }
 0x19a   : > { %v830_v4 = vmul.f32 0.03125, %v828_v3 }
 0x19c   : > { %v831_v5 = vsub.f32 %v2843_v62, %v830_v4 }
 0x19e   : > { %v832_v6 = vmul.f32 %v831_v5, %v831_v5 }
 0x1a0   : > { %v833_v7 = vsel %vm825_vm1, %v832_v6, 0.0 }
 0x1a1   : > { %834 = vadd.xlane.f32.xlu0 %v833_v7 }
 0x22a   : > { %v835_v10 = vpop.xlane.xlu0 %834 }
 0x22b   : > { %v836_v11 = vmul.f32 0.03125, %v835_v10 }
 0x22d   : > { %v837_v12 = vadd.f32 1e-06, %v836_v11 }
 0x22f   : > { %2582 = vrsqrt.f32 %v837_v12 }
 0x23c   : > { %v2583_v19 = vpop.eup %2582 }
 0x23d   : > { %v839_v20 = vmul.f32 %v2583_v19, %v831_v5 }
 0x23f   : > { %v844_v22 = vmul.f32 %v843_v18, %v839_v20  ;;  %v2556_v20 = vld [vmem:[%s3174_s6 + $0x8] sm:$0xff]  }
 0x241   : > { %v849_v23 = vadd.f32 %v848_v21, %v844_v22  ;;  %v2557_v21 = vld [vmem:[%s3174_s6] sm:$0xff]  }
 0x243   : > { %v850_v24 = vpack.c.bf16 %v849_v23, %v849_v23 }
 0x245   : > { %2361 = vmatmul.mubr.msk.bf16.vlgmr.msra.gmra.mxu1 %vm825_vm1, %v850_v24 }
 0x246   : > { %2366 = vmatprep.mubr.msk.bf16.mxu1 %vm2619_vm0, %v2618_v35 }
 0x305   : > { %v911_v26 = vpop.f32.mrf.mxu1 }
 0x306   : > { %v912_v27 = vadd.f32 %v2152_v25, %v911_v26 }
 0x307   : > { %v2362_v28 = vpop.f32.mrf.mxu1 }
 0x308   : > { %v2878_v29 = vpack.c.bf16 %v912_v27, %v912_v27 }
 0x309   : > { %v914_v30 = vpop.f32.mrf.mxu1 }
 0x30a   : > { %985 = vrot.lane.b32.xlu0 %v2878_v29, %s2620_s19  ;;  %919 = vrot.lane.b32.xlu1 %v2878_v29, %s2621_s20  ;;  %v1217_v30 = vsub.s32 6, %v2857_v14 }
 0x30b   : > { %v2363_v31 = vpop.f32.mrf.mxu1 }
 0x37c   : > { %v920_v32 = vpop.permute.xlu1 %919  ;;  %v986_v34 = vpop.permute.xlu0 %985 }
 0x37d   : > { %v926_v33 = vsel %vm921_vm2, %v920_v32, 0  ;;  %v992_v36 = vsel %vm990_vm3, %v986_v34, 0  ;;  %v1218_v32 = vrot.slane %v2863_v16, %v1217_v30 }
 0x37e   : > { %2365 = vmatpush3.bf16.xpose.msra.mxu1 %v926_v33 }
 0x37f   : > { %2370 = vmatprep.subr.bf16.mxu1 %v2618_v35 }
 0x385   : > { %2367 = vmatmul.mubr.msk.bf16.vlgmr.msra.gmra.mxu1 %vm921_vm2, %v2878_v29 }
 0x386   : > { %2371 = vmatpush3.bf16.msra.mxu1 %v992_v36  ;;  %2372 = vmatprep.mubr.msk.bf16.mxu1 %vm2619_vm0, %v2618_v35 }
 0x387   : > { %2376 = vmatprep.subr.bf16.mxu1 %v2618_v35 }
 0x445   : > { %v962_v38 = vpop.f32.mrf.mxu1 }
 0x446   : > { %v968_v39 = vmul.f32 0.25, %v962_v38 }
 0x447   : > { %v2368_v40 = vpop.f32.mrf.mxu1 }
 0x448   : > { %v971_v41 = vsel %vm823_vm4, -1e+30, %v968_v39 }
 0x449   : > { %v965_v42 = vpop.f32.mrf.mxu1  ;;  %v973_v43 = vsel %vm972_vm5, %v971_v41, -inf }
 0x44a   : > { %974 = vmax.xlane.f32.xlu1 %v973_v43 }
 0x44b   : > { %v2369_v44 = vpop.f32.mrf.mxu1 }
 0x4d3   : > { %v975_v45 = vpop.xlane.xlu1 %974 }
 0x4d4   : > { %v976_v46 = vsub.f32 %v971_v41, %v975_v45 }
 0x4d6   : > { %v977_v47 = vmul.f32 1.442695, %v976_v46 }
 0x4d8   : > { %2584 = vpow2.f32 %v977_v47 }
 0x4e5   : > { %v2585_v48 = vpop.eup %2584 }
 0x4e6   : > { %v979_v49 = vsel %vm972_vm5, %v2585_v48, 0.0 }
 0x4e7   : > { %980 = vadd.xlane.f32.xlu0 %v979_v49 }
 0x4fd   : > { %1036 = vrot.lane.b32.xlu0 %v2878_v29, %s2622_s21 }
 0x501   : > { %1034 = vrot.lane.b32.xlu0 %v2878_v29, %s2623_s23 }
 0x570   : > { %v981_v50 = vpop.xlane.xlu0 %980 }
 0x571   : > { %2586 = vrcp.f32 %v981_v50 }
 0x574   : > { %v1037_v53 = vpop.permute.xlu0 %1036 }
 0x575   : > { %v1042_v55 = vsel %vm921_vm2, %v1037_v53, 0  ;;  %v1241_v53 = vsub.s32 3, %v2857_v14 }
 0x578   : > { %v1035_v56 = vpop.permute.xlu0 %1034 }
 0x57e   : > { %v2587_v51 = vpop.eup %2586 }
 0x57f   : > { %v983_v52 = vmul.f32 %v2587_v51, %v2585_v48  ;;  %v2558_v48 = vld [vmem:[%s3175_s7 + $0x8] sm:$0xff]  }
 0x581   : > { %v984_v54 = vpack.c.bf16 %v983_v52, %v983_v52  ;;  %v1236_v52 = vsub.s32 2, %v2857_v14 }
 0x583   : > { %2373 = vmatmul.mubr.msk.bf16.vlgmr.msra.gmra.mxu1 %vm972_vm5, %v984_v54  ;;  %v1237_v54 = vrot.slane %v2863_v16, %v1236_v52 }
 0x584   : > { %2377 = vmatpush3.bf16.xpose.msra.mxu1 %v1042_v55  ;;  %2378 = vmatprep.mubr.msk.bf16.mxu1 %vm2619_vm0, %v2618_v35 }
 0x585   : > { %2382 = vmatprep.subr.bf16.mxu1 %v2618_v35 }
 0x58b   : > { %2379 = vmatmul.mubr.msk.bf16.vlgmr.msra.gmra.mxu1 %vm921_vm2, %v1035_v56 }
 0x58c   : > { %2384 = vmatprep.mubr.msk.bf16.mxu1 %vm2619_vm0, %v2618_v35 }
 0x643   : > { %v1028_v57 = vpop.f32.mrf.mxu1 }
 0x645   : > { %v2374_v58 = vpop.f32.mrf.mxu1 }
 0x647   : > { %v1031_v59 = vpop.f32.mrf.mxu1 }
 0x649   : > { %v2375_v60 = vpop.f32.mrf.mxu1 }
 0x64b   : > { %v1078_v61 = vpop.f32.mrf.mxu1 }
 0x64c   : > { %v1084_v63 = vmul.f32 0.25, %v1078_v61  ;;  %v2560_v61 = vld [vmem:[%s3177_s9 + $0x38] sm:$0xff]  }
 0x64d   : > { %v2380_v0 = vpop.f32.mrf.mxu1 }
 0x64e   : > { %v1085_v1 = vsel %vm823_vm4, -1e+30, %v1084_v63  ;;  %v2561_v63 = vld [vmem:[%s3177_s9 + $0x30] sm:$0xff]   ;;  %v2562_v0 = vld [vmem:[%s3177_s9 + $0x28] sm:$0xff]  }
 0x64f   : > { %v1081_v2 = vpop.f32.mrf.mxu1  ;;  %v1086_v3 = vsel %vm972_vm5, %v1085_v1, -inf }
 0x650   : > { %1087 = vmax.xlane.f32.xlu1 %v1086_v3  ;;  %v2564_v2 = vld [vmem:[%s3177_s9 + $0x18] sm:$0xff]   ;;  %v2565_v3 = vld [vmem:[%s3177_s9 + $0x10] sm:$0xff]  }
 0x651   : > { %v2381_v4 = vpop.f32.mrf.mxu1 }
 0x652   : > { %v2566_v4 = vld [vmem:[%s3177_s9 + $0x8] sm:$0xff]  }
 0x661   : > { %1098 = vrot.lane.b32.xlu1 %v2878_v29, %s2624_s24  ;;  %v1158_v29 = vsub.s32 4, %v2857_v14 }
 0x663   : > { %v1159_v31 = vrot.slane %v2863_v16, %v1158_v29 }
 0x6d9   : > { %v1088_v5 = vpop.xlane.xlu1 %1087 }
 0x6da   : > { %v1089_v6 = vsub.f32 %v1085_v1, %v1088_v5  ;;  %v2563_v1 = vld [vmem:[%s3177_s9 + $0x20] sm:$0xff]  }
 0x6db   : > { %v2567_v5 = vld [vmem:[%s3177_s9] sm:$0xff]  }
 0x6dc   : > { %v1090_v7 = vmul.f32 1.442695, %v1089_v6  ;;  %v2163_v6 = vld [vmem:[%s3176_s8] ss:$0 sm:$0xff] }
 0x6dd   : > { %v1099_v8 = vpop.permute.xlu1 %1098 }
 0x6de   : > { %2588 = vpow2.f32 %v1090_v7  ;;  %v1104_v9 = vsel %vm990_vm3, %v1099_v8, 0 }
 0x6df   : > { %2383 = vmatpush3.bf16.msra.mxu1 %v1104_v9 }
 0x6e0   : > { %2388 = vmatprep.subr.bf16.mxu1 %v2618_v35 }
 0x6eb   : > { %v2589_v10 = vpop.eup %2588 }
 0x6ec   : > { %v1092_v11 = vsel %vm972_vm5, %v2589_v10, 0.0 }
 0x6ed   : > { %1093 = vadd.xlane.f32.xlu0 %v1092_v11 }
 0x776   : > { %v1094_v12 = vpop.xlane.xlu0 %1093 }
 0x777   : > { %2590 = vrcp.f32 %v1094_v12 }
 0x784   : > { %v2591_v13 = vpop.eup %2590 }
 0x785   : > { %v1096_v18 = vmul.f32 %v2591_v13, %v2589_v10 }
 0x787   : > { %v1097_v19 = vpack.c.bf16 %v1096_v18, %v1096_v18 }
 0x789   : > { %2385 = vmatmul.mubr.msk.bf16.vlgmr.msra.gmra.mxu1 %vm972_vm5, %v1097_v19 }
 0x78a   : > { %2392 = vmatprep.mubr.msk.bf16.mxu1 %vm2619_vm0, %v2618_v35  ;;  %2389 = vmatpush3.bf16.msra.mxu1 %v2556_v20 }
 0x78b   : > { %2390 = vmatprep.subr.bf16.mxu1 %v2618_v35 }
 0x78e   : > { %2391 = vmatpush3.bf16.msra.mxu1 %v2557_v21 }
 0x78f   : > { %2396 = vmatprep.subr.bf16.mxu1 %v2618_v35 }
 0x849   : > { %v1140_v22 = vpop.f32.mrf.mxu1 }
 0x84a   : > { %1147 = vrot.lane.b32.xlu1 %v1140_v22, %s2625_s29 }
 0x84b   : > { %v2386_v23 = vpop.f32.mrf.mxu1 }
 0x84d   : > { %v1143_v24 = vpop.f32.mrf.mxu1 }
 0x84f   : > { %v2387_v25 = vpop.f32.mrf.mxu1 }
 0x8bc   : > { %v1148_v26 = vpop.permute.xlu1 %1147 }
 0x8bd   : > { %v1150_v27 = vsel %vm921_vm2, %v1028_v57, %v1148_v26  ;;  %v1242_v57 = vrot.slane %v2863_v16, %v1241_v53  ;;  %v1339_v26 = vsub.s32 5, %v2857_v14 }
 0x8be   : > { %v1151_v28 = vpack.c.bf16 %v1150_v27, %v1150_v27  ;;  %v1431_v27 = vsub.s32 7, %v2857_v14 }
 0x8c0   : > { %2393 = vmatmul.mubr.msk.bf16.vlgmr.msra.gmra.mxu1 %vm825_vm1, %v1151_v28  ;;  %v1340_v28 = vrot.slane %v2863_v16, %v1339_v26 }
 0x8c1   : > { %2400 = vmatprep.mubr.msk.bf16.mxu1 %vm2619_vm0, %v2618_v35  ;;  %2397 = vmatpush3.bf16.msra.mxu1 %v2558_v48 }
 0x8c2   : > { %2398 = vmatprep.subr.bf16.mxu1 %v2618_v35 }
 0x980   : > { %v1209_v33 = vpop.f32.mrf.mxu1 }
 0x981   : > { %v1210_v34 = vadd.f32 %v1209_v33, %v1159_v31  ;;  %v1432_v31 = vrot.slane %v2863_v16, %v1431_v27 }
 0x982   : > { %v2394_v36 = vpop.f32.mrf.mxu1 }
 0x983   : > { %v1219_v38 = vmul.f32 %v1218_v32, %v1210_v34 }
 0x984   : > { %v1212_v39 = vpop.f32.mrf.mxu1 }
 0x985   : > { %v2944_v40 = vadd.f32 %v1219_v38, %v2843_v62  ;;  %v2559_v62 = vld [vmem:[%s3175_s7] sm:$0xff]  }
 0x986   : > { %v2395_v41 = vpop.f32.mrf.mxu1  ;;  %2399 = vmatpush3.bf16.msra.mxu1 %v2559_v62 }
 0x987   : > { %v1221_v42 = vsel %vm825_vm1, %v2944_v40, 0.0  ;;  %2404 = vmatprep.subr.bf16.mxu1 %v2618_v35 }
 0x988   : > { %1222 = vadd.xlane.f32.xlu1 %v1221_v42 }
 0xa11   : > { %v1223_v43 = vpop.xlane.xlu1 %1222 }
 0xa12   : > { %v1224_v44 = vmul.f32 0.03125, %v1223_v43 }
 0xa14   : > { %v1225_v45 = vsub.f32 %v2944_v40, %v1224_v44 }
 0xa16   : > { %v1226_v46 = vmul.f32 %v1225_v45, %v1225_v45 }
 0xa18   : > { %v1227_v47 = vsel %vm825_vm1, %v1226_v46, 0.0 }
 0xa19   : > { %1228 = vadd.xlane.f32.xlu0 %v1227_v47  ;;  %v2568_v47 = vld [vmem:[%s3172_s4 + $0x18] sm:$0xff]  }
 0xa1a   : > { %2425 = vmatpush3.bf16.msra.mxu0 %v2568_v47 }
 0xa1b   : > { %2426 = vmatprep.subr.bf16.mxu0 %v2618_v35 }
 0xaa2   : > { %v1229_v49 = vpop.xlane.xlu0 %1228 }
 0xaa3   : > { %v1230_v50 = vmul.f32 0.03125, %v1229_v49 }
 0xaa5   : > { %v1231_v51 = vadd.f32 1e-06, %v1230_v50  ;;  %v3032_v50 = vld [vmem:[%s3171_s3 + $0x8] sm:$0xff] }
 0xaa7   : > { %2592 = vrsqrt.f32 %v1231_v51  ;;  %v1453_v51 = vrot.slane %v3032_v50, %v842_v15 }
 0xab4   : > { %v2593_v55 = vpop.eup %2592 }
 0xab5   : > { %v1233_v56 = vmul.f32 %v2593_v55, %v1225_v45 }
 0xab7   : > { %v1238_v58 = vmul.f32 %v1237_v54, %v1233_v56  ;;  %v1458_v56 = vrot.slane %v3032_v50, %v847_v17 }
 0xab9   : > { %v1243_v59 = vadd.f32 %v1242_v57, %v1238_v58 }
 0xabb   : > { %v1244_v60 = vpack.c.bf16 %v1243_v59, %v1243_v59 }
 0xabd   : > { %2401 = vmatmul.mubr.msk.bf16.vlgmr.msra.gmra.mxu1 %vm825_vm1, %v1244_v60  ;;  %v2181_v60 = vld [vmem:[%s3173_s5 + $0x1] ss:$0 sm:$0xff] }
 0xabe   : > { %2420 = vmatprep.mubr.msk.bf16.mxu1 %vm2619_vm0, %v2618_v35  ;;  %2405 = vmatpush3.bf16.msra.mxu1 %v2560_v61 }
 0xabf   : > { %2406 = vmatprep.subr.bf16.mxu1 %v2618_v35 }
 0xac2   : > { %2407 = vmatpush3.bf16.msra.mxu1 %v2561_v63 }
 0xac3   : > { %2408 = vmatprep.subr.bf16.mxu1 %v2618_v35 }
 0xac6   : > { %2409 = vmatpush3.bf16.msra.mxu1 %v2562_v0 }
 0xac7   : > { %2410 = vmatprep.subr.bf16.mxu1 %v2618_v35 }
 0xaca   : > { %2411 = vmatpush3.bf16.msra.mxu1 %v2563_v1 }
 0xacb   : > { %2412 = vmatprep.subr.bf16.mxu1 %v2618_v35 }
 0xace   : > { %2413 = vmatpush3.bf16.msra.mxu1 %v2564_v2 }
 0xacf   : > { %2414 = vmatprep.subr.bf16.mxu1 %v2618_v35 }
 0xad2   : > { %2415 = vmatpush3.bf16.msra.mxu1 %v2565_v3 }
 0xad3   : > { %2416 = vmatprep.subr.bf16.mxu1 %v2618_v35 }
 0xad6   : > { %2417 = vmatpush3.bf16.msra.mxu1 %v2566_v4 }
 0xad7   : > { %2418 = vmatprep.subr.bf16.mxu1 %v2618_v35 }
 0xada   : > { %2419 = vmatpush3.bf16.msra.mxu1 %v2567_v5 }
 0xadb   : > { %2450 = vmatprep.subr.bf16.mxu1 %v2618_v35 }
 0xb7d   : > { %v1305_v7 = vpop.f32.mrf.mxu1 }
 0xb7e   : > { %v1306_v8 = vadd.f32 %v2163_v6, %v1305_v7 }
 0xb7f   : > { %v2402_v9 = vpop.f32.mrf.mxu1 }
 0xb80   : > { %v1311_v10 = vmul.f32 %v1306_v8, %v1306_v8 }
 0xb81   : > { %v1308_v11 = vpop.f32.mrf.mxu1 }
 0xb82   : > { %v1312_v12 = vmul.f32 %v1311_v10, %v1306_v8 }
 0xb83   : > { %v2403_v13 = vpop.f32.mrf.mxu1 }
 0xb84   : > { %v1313_v18 = vmul.f32 0.044715, %v1312_v12 }
 0xb86   : > { %v1314_v19 = vadd.f32 %v1313_v18, %v1306_v8 }
 0xb88   : > { %v1315_v20 = vmul.f32 0.7978846, %v1314_v19 }
 0xb8a   : > { %2594 = vtanh.f32 %v1315_v20 }
 0xb97   : > { %v2595_v21 = vpop.eup %2594 }
 0xb98   : > { %v1317_v22 = vadd.f32 1.0, %v2595_v21 }
 0xb9a   : > { %v1318_v23 = vmul.f32 0.5, %v1317_v22 }
 0xb9c   : > { %v1319_v24 = vmul.f32 %v1318_v23, %v1306_v8 }
 0xb9e   : > { %v1320_v25 = vpack.c.bf16 %v1319_v24, %v1319_v24 }
 0xba0   : > { %2421 = vmatmul.mubr.bf16.vlgmr.msra.gmra.mxu1 %v1320_v25 }
 0xba1   : > { %2452 = vmatprep.mubr.msk.bf16.mxu1 %vm2619_vm0, %v2618_v35 }
 0xc60   : > { %v1423_v32 = vpop.f32.mrf.mxu1 }
 0xc61   : > { %v1424_v33 = vadd.f32 %v1423_v32, %v1340_v28 }
 0xc62   : > { %v2422_v34 = vpop.f32.mrf.mxu1 }
 0xc63   : > { %v1433_v36 = vmul.f32 %v1432_v31, %v1424_v33 }
 0xc64   : > { %v1426_v38 = vpop.f32.mrf.mxu1 }
 0xc65   : > { %v3015_v39 = vadd.f32 %v1433_v36, %v2944_v40  ;;  %v2569_v40 = vld [vmem:[%s3172_s4 + $0x10] sm:$0xff]  }
 0xc66   : > { %v2423_v41 = vpop.f32.mrf.mxu1  ;;  %2427 = vmatpush3.bf16.msra.mxu0 %v2569_v40 }
 0xc67   : > { %v1437_v42 = vsel %vm825_vm1, %v3015_v39, 0.0  ;;  %2432 = vmatprep.subr.bf16.mxu0 %v2618_v35 }
 0xc68   : > { %1438 = vadd.xlane.f32.xlu0 %v1437_v42 }
 0xcf1   : > { %v1439_v43 = vpop.xlane.xlu0 %1438 }
 0xcf2   : > { %v1440_v44 = vmul.f32 0.03125, %v1439_v43 }
 0xcf4   : > { %v1441_v45 = vsub.f32 %v3015_v39, %v1440_v44 }
 0xcf6   : > { %v1442_v46 = vmul.f32 %v1441_v45, %v1441_v45 }
 0xcf8   : > { %v1443_v16 = vsel %vm825_vm1, %v1442_v46, 0.0 }
 0xcf9   : > { %1444 = vadd.xlane.f32.xlu0 %v1443_v16 }
 0xd82   : > { %v1445_v48 = vpop.xlane.xlu0 %1444 }
 0xd83   : > { %v1446_v62 = vmul.f32 0.03125, %v1445_v48 }
 0xd85   : > { %v1447_v49 = vadd.f32 1e-06, %v1446_v62 }
 0xd87   : > { %2596 = vrsqrt.f32 %v1447_v49 }
 0xd94   : > { %v2597_v54 = vpop.eup %2596 }
 0xd95   : > { %v1449_v55 = vmul.f32 %v2597_v54, %v1441_v45 }
 0xd97   : > { %v1454_v57 = vmul.f32 %v1453_v51, %v1449_v55 }
 0xd99   : > { %v1459_v58 = vadd.f32 %v1458_v56, %v1454_v57 }
 0xd9b   : > { %v1460_v59 = vpack.c.bf16 %v1459_v58, %v1459_v58  ;;  %v2570_v58 = vld [vmem:[%s3174_s6 + $0x18] sm:$0xff]  }
 0xd9d   : > { %2429 = vmatmul.mubr.msk.bf16.vlgmr.msra.gmra.mxu0 %vm825_vm1, %v1460_v59  ;;  %v2571_v59 = vld [vmem:[%s3174_s6 + $0x10] sm:$0xff]  }
 0xd9e   : > { %2434 = vmatprep.mubr.msk.bf16.mxu0 %vm2619_vm0, %v2618_v35 }
 0xe5d   : > { %v1523_v61 = vpop.f32.mrf.mxu0 }
 0xe5e   : > { %v1524_v15 = vadd.f32 %v2181_v60, %v1523_v61 }
 0xe5f   : > { %v2430_v63 = vpop.f32.mrf.mxu0 }
 0xe60   : > { %v1529_v0 = vpack.c.bf16 %v1524_v15, %v1524_v15 }
 0xe61   : > { %v1526_v1 = vpop.f32.mrf.mxu0 }
 0xe62   : > { %1531 = vrot.lane.b32.xlu0 %v1529_v0, %s2621_s20 }
 0xe63   : > { %v2431_v17 = vpop.f32.mrf.mxu0 }
 0xe66   : > { %1593 = vrot.lane.b32.xlu0 %v1529_v0, %s2620_s19 }
 0xe6a   : > { %1641 = vrot.lane.b32.xlu0 %v1529_v0, %s2623_s23 }
 0xed4   : > { %v1532_v2 = vpop.permute.xlu0 %1531 }
 0xed5   : > { %v1537_v3 = vsel %vm921_vm2, %v1532_v2, 0  ;;  %v1767_v2 = vrot.slane %v3032_v50, %v1158_v29 }
 0xed6   : > { %2433 = vmatpush3.bf16.xpose.msra.mxu0 %v1537_v3  ;;  %v1826_v3 = vrot.slane %v3032_v50, %v1217_v30 }
 0xed7   : > { %2438 = vmatprep.subr.bf16.mxu0 %v2618_v35 }
 0xed8   : > { %v1594_v4 = vpop.permute.xlu0 %1593 }
 0xed9   : > { %v1599_v5 = vsel %vm990_vm3, %v1594_v4, 0 }
 0xedc   : > { %v1642_v32 = vpop.permute.xlu0 %1641 }
 0xedd   : > { %2435 = vmatmul.mubr.msk.bf16.vlgmr.msra.gmra.mxu0 %vm921_vm2, %v1529_v0 }
 0xede   : > { %2439 = vmatpush3.bf16.msra.mxu0 %v1599_v5  ;;  %2440 = vmatprep.mubr.msk.bf16.mxu0 %vm2619_vm0, %v2618_v35 }
 0xedf   : > { %2444 = vmatprep.subr.bf16.mxu0 %v2618_v35 }
 0xf9d   : > { %v1573_v6 = vpop.f32.mrf.mxu0 }
 0xf9e   : > { %v1579_v7 = vmul.f32 0.25, %v1573_v6 }
 0xf9f   : > { %v2436_v8 = vpop.f32.mrf.mxu0 }
 0xfa0   : > { %v1580_v9 = vsel %vm823_vm4, -1e+30, %v1579_v7 }
 0xfa1   : > { %v1576_v10 = vpop.f32.mrf.mxu0  ;;  %v1581_v11 = vsel %vm972_vm5, %v1580_v9, -inf }
 0xfa2   : > { %1582 = vmax.xlane.f32.xlu1 %v1581_v11 }
 0xfa3   : > { %v2437_v12 = vpop.f32.mrf.mxu0 }
0x102b   : > { %v1583_v13 = vpop.xlane.xlu1 %1582 }
0x102c   : > { %v1584_v18 = vsub.f32 %v1580_v9, %v1583_v13 }
0x102e   : > { %v1585_v19 = vmul.f32 1.442695, %v1584_v18 }
0x1030   : > { %2598 = vpow2.f32 %v1585_v19  ;;  %v2572_v19 = vld [vmem:[%s3175_s7 + $0x18] sm:$0xff]  }
0x103d   : > { %v2599_v20 = vpop.eup %2598 }
0x103e   : > { %v1587_v21 = vsel %vm972_vm5, %v2599_v20, 0.0 }
0x103f   : > { %1588 = vadd.xlane.f32.xlu1 %v1587_v21 }
0x1050   : > { %1643 = vrot.lane.b32.xlu1 %v1529_v0, %s2622_s21 }
0x10c8   : > { %v1589_v22 = vpop.xlane.xlu1 %1588 }
0x10c9   : > { %2600 = vrcp.f32 %v1589_v22 }
0x10cc   : > { %v1644_v25 = vpop.permute.xlu1 %1643 }
0x10cd   : > { %v1649_v31 = vsel %vm921_vm2, %v1644_v25, 0 }
0x10d6   : > { %v2601_v23 = vpop.eup %2600 }
0x10d7   : > { %v1591_v24 = vmul.f32 %v2601_v23, %v2599_v20  ;;  %v1845_v23 = vrot.slane %v3032_v50, %v1236_v52  ;;  %v2575_v52 = vld [vmem:[%s3177_s9 + $0x70] sm:$0xff]  }
0x10d9   : > { %v1592_v28 = vpack.c.bf16 %v1591_v24, %v1591_v24 }
0x10db   : > { %2441 = vmatmul.mubr.msk.bf16.vlgmr.msra.gmra.mxu0 %vm972_vm5, %v1592_v28  ;;  %v1850_v28 = vrot.slane %v3032_v50, %v1241_v53  ;;  %v2576_v53 = vld [vmem:[%s3177_s9 + $0x68] sm:$0xff]  }
0x10dc   : > { %2445 = vmatpush3.bf16.xpose.msra.mxu0 %v1649_v31  ;;  %2446 = vmatprep.mubr.msk.bf16.mxu0 %vm2619_vm0, %v2618_v35 }
0x10dd   : > { %2456 = vmatprep.subr.bf16.mxu0 %v2618_v35 }
0x10e3   : > { %2447 = vmatmul.mubr.msk.bf16.vlgmr.msra.gmra.mxu0 %vm921_vm2, %v1642_v32 }
0x10e4   : > { %2460 = vmatprep.mubr.msk.bf16.mxu0 %vm2619_vm0, %v2618_v35  ;;  %2457 = vmatpush3.bf16.msra.mxu0 %v2570_v58  ;;  %v1951_v58 = vrot.slane %v3032_v50, %v1339_v26 }
0x10e5   : > { %2458 = vmatprep.subr.bf16.mxu0 %v2618_v35 }
0x10e8   : > { %2459 = vmatpush3.bf16.msra.mxu0 %v2571_v59  ;;  %v2043_v59 = vrot.slane %v3032_v50, %v1431_v27 }
0x10e9   : > { %2472 = vmatprep.subr.bf16.mxu0 %v2618_v35 }
0x119b   : > { %v1635_v33 = vpop.f32.mrf.mxu0 }
0x119d   : > { %v2442_v34 = vpop.f32.mrf.mxu0 }
0x119e   : > { %v2574_v34 = vld [vmem:[%s3177_s9 + $0x78] sm:$0xff]  }
0x119f   : > { %v1638_v36 = vpop.f32.mrf.mxu0 }
0x11a0   : > { %v2577_v36 = vld [vmem:[%s3177_s9 + $0x60] sm:$0xff]  }
0x11a1   : > { %v2443_v38 = vpop.f32.mrf.mxu0 }
0x11a2   : > { %v2578_v38 = vld [vmem:[%s3177_s9 + $0x58] sm:$0xff]  }
0x11a3   : > { %v1685_v41 = vpop.f32.mrf.mxu0 }
0x11a4   : > { %v1691_v42 = vmul.f32 0.25, %v1685_v41  ;;  %v2579_v41 = vld [vmem:[%s3177_s9 + $0x50] sm:$0xff]  }
0x11a5   : > { %v2448_v43 = vpop.f32.mrf.mxu0 }
0x11a6   : > { %v1692_v44 = vsel %vm823_vm4, -1e+30, %v1691_v42  ;;  %v2580_v42 = vld [vmem:[%s3177_s9 + $0x48] sm:$0xff]   ;;  %v2581_v43 = vld [vmem:[%s3177_s9 + $0x40] sm:$0xff]  }
0x11a7   : > { %v1688_v45 = vpop.f32.mrf.mxu0  ;;  %v1693_v46 = vsel %vm972_vm5, %v1692_v44, -inf }
0x11a8   : > { %1694 = vmax.xlane.f32.xlu0 %v1693_v46 }
0x11a9   : > { %v2449_v16 = vpop.f32.mrf.mxu0 }
0x11be   : > { %1705 = vrot.lane.b32.xlu0 %v1529_v0, %s2624_s24 }
0x1231   : > { %v1695_v47 = vpop.xlane.xlu0 %1694 }
0x1232   : > { %v1696_v40 = vsub.f32 %v1692_v44, %v1695_v47  ;;  %v2201_v44 = vld [vmem:[%s3176_s8 + $0x1] ss:$0 sm:$0xff] }
0x1234   : > { %v1697_v48 = vmul.f32 1.442695, %v1696_v40 }
0x1235   : > { %v1706_v62 = vpop.permute.xlu0 %1705 }
0x1236   : > { %2602 = vpow2.f32 %v1697_v48  ;;  %v1711_v49 = vsel %vm990_vm3, %v1706_v62, 0 }
0x1237   : > { %2451 = vmatpush3.bf16.msra.mxu1 %v1711_v49 }
0x1238   : > { %2464 = vmatprep.subr.bf16.mxu1 %v2618_v35 }
0x1243   : > { %v2603_v51 = vpop.eup %2602 }
0x1244   : > { %v1699_v37 = vsel %vm972_vm5, %v2603_v51, 0.0 }
0x1245   : > { %1700 = vadd.xlane.f32.xlu1 %v1699_v37 }
0x12ce   : > { %v1701_v54 = vpop.xlane.xlu1 %1700 }
0x12cf   : > { %2604 = vrcp.f32 %v1701_v54 }
0x12dc   : > { %v2605_v55 = vpop.eup %2604 }
0x12dd   : > { %v1703_v56 = vmul.f32 %v2605_v55, %v2603_v51 }
0x12df   : > { %v1704_v57 = vpack.c.bf16 %v1703_v56, %v1703_v56 }
0x12e1   : > { %2453 = vmatmul.mubr.msk.bf16.vlgmr.msra.gmra.mxu1 %vm972_vm5, %v1704_v57 }
0x12e2   : > { %2468 = vmatprep.mubr.msk.bf16.mxu1 %vm2619_vm0, %v2618_v35  ;;  %2465 = vmatpush3.bf16.msra.mxu1 %v2572_v19 }
0x12e3   : > { %2466 = vmatprep.subr.bf16.mxu1 %v2618_v35 }
0x13a1   : > { %v1747_v60 = vpop.f32.mrf.mxu1 }
0x13a2   : > { %1754 = vrot.lane.b32.xlu1 %v1747_v60, %s2625_s29 }
0x13a3   : > { %v2454_v61 = vpop.f32.mrf.mxu1 }
0x13a5   : > { %v1750_v15 = vpop.f32.mrf.mxu1 }
0x13a7   : > { %v2455_v63 = vpop.f32.mrf.mxu1 }
0x1414   : > { %v1755_v0 = vpop.permute.xlu1 %1754 }
0x1415   : > { %v1757_v1 = vsel %vm921_vm2, %v1635_v33, %v1755_v0 }
0x1416   : > { %v1758_v17 = vpack.c.bf16 %v1757_v1, %v1757_v1 }
0x1418   : > { %2461 = vmatmul.mubr.msk.bf16.vlgmr.msra.gmra.mxu0 %vm825_vm1, %v1758_v17 }
0x1419   : > { %2488 = vmatprep.mubr.msk.bf16.mxu0 %vm2619_vm0, %v2618_v35  ;;  %2473 = vmatpush3.bf16.msra.mxu0 %v2574_v34 }
0x141a   : > { %2474 = vmatprep.subr.bf16.mxu0 %v2618_v35 }
0x141d   : > { %2475 = vmatpush3.bf16.msra.mxu0 %v2575_v52 }
0x141e   : > { %2476 = vmatprep.subr.bf16.mxu0 %v2618_v35 }
0x1421   : > { %2477 = vmatpush3.bf16.msra.mxu0 %v2576_v53 }
0x1422   : > { %2478 = vmatprep.subr.bf16.mxu0 %v2618_v35 }
0x1425   : > { %2479 = vmatpush3.bf16.msra.mxu0 %v2577_v36 }
0x1426   : > { %2480 = vmatprep.subr.bf16.mxu0 %v2618_v35 }
0x1429   : > { %2481 = vmatpush3.bf16.msra.mxu0 %v2578_v38 }
0x142a   : > { %2482 = vmatprep.subr.bf16.mxu0 %v2618_v35 }
0x142d   : > { %2483 = vmatpush3.bf16.msra.mxu0 %v2579_v41 }
0x142e   : > { %2484 = vmatprep.subr.bf16.mxu0 %v2618_v35 }
0x1431   : > { %2485 = vmatpush3.bf16.msra.mxu0 %v2580_v42 }
0x1432   : > { %2486 = vmatprep.subr.bf16.mxu0 %v2618_v35 }
0x1435   : > { %2487 = vmatpush3.bf16.msra.mxu0 %v2581_v43 }
0x14d8   : > { %v1817_v4 = vpop.f32.mrf.mxu0 }
0x14d9   : > { %v1818_v5 = vadd.f32 %v1817_v4, %v1767_v2 }
0x14da   : > { %v2462_v6 = vpop.f32.mrf.mxu0 }
0x14db   : > { %v1827_v7 = vmul.f32 %v1826_v3, %v1818_v5 }
0x14dc   : > { %v1820_v8 = vpop.f32.mrf.mxu0 }
0x14dd   : > { %v3099_v9 = vadd.f32 %v1827_v7, %v3015_v39  ;;  %v2573_v39 = vld [vmem:[%s3175_s7 + $0x10] sm:$0xff]  }
0x14de   : > { %v2463_v10 = vpop.f32.mrf.mxu0  ;;  %2467 = vmatpush3.bf16.msra.mxu1 %v2573_v39 }
0x14df   : > { %v1829_v11 = vsel %vm825_vm1, %v3099_v9, 0.0 }
0x14e0   : > { %1830 = vadd.xlane.f32.xlu0 %v1829_v11 }
0x1569   : > { %v1831_v12 = vpop.xlane.xlu0 %1830 }
0x156a   : > { %v1832_v13 = vmul.f32 0.03125, %v1831_v12 }
0x156c   : > { %v1833_v29 = vsub.f32 %v3099_v9, %v1832_v13 }
0x156e   : > { %v1834_v18 = vmul.f32 %v1833_v29, %v1833_v29 }
0x1570   : > { %v1835_v30 = vsel %vm825_vm1, %v1834_v18, 0.0 }
0x1571   : > { %1836 = vadd.xlane.f32.xlu1 %v1835_v30 }
0x15fa   : > { %v1837_v20 = vpop.xlane.xlu1 %1836 }
0x15fb   : > { %v1838_v21 = vmul.f32 0.03125, %v1837_v20 }
0x15fd   : > { %v1839_v22 = vadd.f32 1e-06, %v1838_v21 }
0x15ff   : > { %2606 = vrsqrt.f32 %v1839_v22 }
0x160c   : > { %v2607_v24 = vpop.eup %2606 }
0x160d   : > { %v1841_v25 = vmul.f32 %v2607_v24, %v1833_v29 }
0x160f   : > { %v1846_v31 = vmul.f32 %v1845_v23, %v1841_v25 }
0x1611   : > { %v1851_v32 = vadd.f32 %v1850_v28, %v1846_v31 }
0x1613   : > { %v1852_v33 = vpack.c.bf16 %v1851_v32, %v1851_v32 }
0x1615   : > { %2469 = vmatmul.mubr.msk.bf16.vlgmr.msra.gmra.mxu1 %vm825_vm1, %v1852_v33 }
0x16d5   : > { %v1915_v45 = vpop.f32.mrf.mxu1 }
0x16d6   : > { %v1916_v46 = vadd.f32 %v2201_v44, %v1915_v45 }
0x16d7   : > { %v2470_v16 = vpop.f32.mrf.mxu1 }
0x16d8   : > { %v1921_v47 = vmul.f32 %v1916_v46, %v1916_v46 }
0x16d9   : > { %v1918_v40 = vpop.f32.mrf.mxu1 }
0x16da   : > { %v1922_v48 = vmul.f32 %v1921_v47, %v1916_v46 }
0x16db   : > { %v2471_v62 = vpop.f32.mrf.mxu1 }
0x16dc   : > { %v1923_v49 = vmul.f32 0.044715, %v1922_v48 }
0x16de   : > { %v1924_v51 = vadd.f32 %v1923_v49, %v1916_v46 }
0x16e0   : > { %v1925_v37 = vmul.f32 0.7978846, %v1924_v51 }
0x16e2   : > { %2608 = vtanh.f32 %v1925_v37 }
0x16ef   : > { %v2609_v54 = vpop.eup %2608 }
0x16f0   : > { %v1927_v55 = vadd.f32 1.0, %v2609_v54 }
0x16f2   : > { %v1928_v35 = vmul.f32 0.5, %v1927_v55 }
0x16f4   : > { %v1929_v56 = vmul.f32 %v1928_v35, %v1916_v46 }
0x16f6   : > { %v1930_v57 = vpack.c.bf16 %v1929_v56, %v1929_v56 }
0x16f8   : > { %2489 = vmatmul.mubr.bf16.vlgmr.msra.gmra.mxu0 %v1930_v57 }
0x17b8   : > { %v2034_v60 = vpop.f32.mrf.mxu0 }
0x17b9   : > { %v2035_v61 = vadd.f32 %v2034_v60, %v1951_v58 }
0x17ba   : > { %v2490_v15 = vpop.f32.mrf.mxu0 }
0x17bb   : > { %v2044_v63 = vmul.f32 %v2043_v59, %v2035_v61 }
0x17bc   : > { %v2037_v0 = vpop.f32.mrf.mxu0 }
0x17bd   : > { %v2045_v1 = vadd.f32 %v2044_v63, %v3099_v9 }
0x17be   : > { %v2491_v17 = vpop.f32.mrf.mxu0 }
0x17bf   : > { %2046 = vst.msk [vmem:[%s357_s28] sm:$0xff] %vm825_vm1, %v2045_v1 }
0x17c0 PF: > { %s20_s13 = sadd.s32 1, %s2616_s13  }
0x17c1   : > { %p17_p4 = scmp.ge.s32.totalorder %s20_s13, 4  }
0x17c3   :  { %19 = sbr.rel (!%p17_p4) target bundleno = 1 (0x1), region = 97 }

</bundles_post_ra>
